<compile_context>
chip_gen: v6e
topology: v6e:2x2x1
jax: 0.10.0
libtpu: 0.0.40
codegen_flags: <defaults>
</compile_context>

<pallas_src>
import functools
import math

import jax
import jax.numpy as jnp
from jax import lax
from jax.experimental import pallas as pl
from jax.experimental.pallas import tpu as pltpu


# --------------------------------------------------------------------------
# Pallas kernel: one (batch-tile, layer) grid step of the fused backbone.
# --------------------------------------------------------------------------
def _fused_prefix_backbone_kernel(x_ref, wq_ref, wk_ref, wv_ref, wo_ref,
                                  pk_ref, pv_ref, o_ref, xc_ref, ctx_ref,
                                  *, num_heads, head_dim, seq_len):
    # x_ref  : (1, M, D) f32   M = TB*S rows of input activations (batch tile)
    # w*_ref : (1, D, D) bf16  per-layer frozen projection weights (streamed)
    # pk/pv  : (1, P, D) bf16  per-layer prefixes, lane-dense (heads on lanes)
    # o_ref  : (1, M, D) f32   output features
    # xc_ref : (M, D)    f32   VMEM activation carried across layers
    # ctx_ref: (M, D)    f32   VMEM per-layer attention-context slab
    l = pl.program_id(1)
    n_layers = pl.num_programs(1)

    M, D = xc_ref.shape
    H, Dh, S = num_heads, head_dim, seq_len
    TB = M // S
    P = pk_ref.shape[1]

    @pl.when(l == 0)
    def _():
        xc_ref[...] = x_ref[0]                      # f32 carry init per batch tile

    x_f32 = xc_ref[...]                             # (M, D) f32 carry
    x_bf = x_f32.astype(jnp.bfloat16)               # bf16 operand for the MXU

    # Full-width QKV projections; 1/sqrt(Dh) is pre-folded into Wq.
    q = jnp.dot(x_bf, wq_ref[0], preferred_element_type=jnp.float32)   # (M, D)
    k = jnp.dot(x_bf, wk_ref[0], preferred_element_type=jnp.float32)   # (M, D)
    v = jnp.dot(x_bf, wv_ref[0], preferred_element_type=jnp.float32)   # (M, D)

    pk_full = pk_ref[0]                             # (P, D) bf16
    pv_full = pv_ref[0]                             # (P, D) bf16

    dn = (((1,), (1,)), ((), ()))                   # contract last dims (no .T)
    for h in range(H):                              # static loop over heads
        lo = h * Dh
        qh = q[:, lo:lo + Dh].astype(jnp.bfloat16)  # (M, Dh)
        kh = k[:, lo:lo + Dh].astype(jnp.bfloat16)  # (M, Dh)
        vh = v[:, lo:lo + Dh].astype(jnp.bfloat16)  # (M, Dh)
        pkh = pk_full[:, lo:lo + Dh]                # (P, Dh)
        pvh = pv_full[:, lo:lo + Dh]                # (P, Dh)

        # Prefix scores (keys shared across the batch): (M, P).
        s_p = lax.dot_general(qh, pkh, dn, preferred_element_type=jnp.float32)

        # Sequence scores per batch element (block-diagonal attention).
        qh3 = qh.reshape(TB, S, Dh)
        kh3 = kh.reshape(TB, S, Dh)
        vh3 = vh.reshape(TB, S, Dh)
        s_x = jnp.einsum('bqd,bkd->bqk', qh3, kh3,
                         preferred_element_type=jnp.float32)            # (TB,S,S)

        # Joint softmax over [prefix keys | sequence keys] (no concat needed).
        s_p3 = s_p.reshape(TB, S, P)
        m = jnp.maximum(s_p3.max(axis=-1, keepdims=True),
                        s_x.max(axis=-1, keepdims=True))                # (TB,S,1)
        e_p = jnp.exp(s_p3 - m)
        e_x = jnp.exp(s_x - m)
        denom = e_p.sum(axis=-1, keepdims=True) + e_x.sum(axis=-1, keepdims=True)
        inv = pl.reciprocal(denom)                  # exact EUP divide

        ctx_p = jnp.dot(e_p.reshape(M, P).astype(jnp.bfloat16), pvh,
                        preferred_element_type=jnp.float32)             # (M, Dh)
        ctx_x = jnp.einsum('bqk,bkd->bqd', e_x.astype(jnp.bfloat16), vh3,
                           preferred_element_type=jnp.float32)          # (TB,S,Dh)
        ctx_h = (ctx_p + ctx_x.reshape(M, Dh)) * inv.reshape(M, 1)

        # Write into the context slab (no jnp.concatenate of per-head tiles).
        ctx_ref[:, lo:lo + Dh] = ctx_h

    ctx = ctx_ref[...].astype(jnp.bfloat16)                             # (M, D)
    attn_out = jnp.dot(ctx, wo_ref[0], preferred_element_type=jnp.float32)

    x_new = x_f32 + attn_out                        # residual, kept in f32
    xc_ref[...] = x_new

    @pl.when(l == n_layers - 1)
    def _():
        o_ref[0] = x_new.astype(o_ref.dtype)


# --------------------------------------------------------------------------
# Module-level forward (glue in plain JAX, entire backbone in one kernel).
# --------------------------------------------------------------------------
def supervised_learning_with_prefixes_forward(samples, params, *, batch_tile=None):
    """samples: [B, S, D] -> backbone features [B, S, D] (f32)."""
    B, S, D = samples.shape
    wq, wk, wv, wo = params["wq"], params["wk"], params["wv"], params["wo"]
    L = wq.shape[0]
    prefixes = params["prefixes_base_task"]          # [L, 2, H, P, Dh]
    _, _, H, P, Dh = prefixes.shape
    assert H * Dh == D

    # Batch tile: TB*S rows feed the MXU M dimension; with TB = B each layer's
    # weights are DMA'd exactly once per call.  (For v7x keep the number of
    # batch tiles even so both TensorCores get work.)
    TB = B if batch_tile is None else batch_tile
    assert B % TB == 0
    num_bt = B // TB
    M = TB * S

    # prepare_prefixes: the batch stack + permute of the reference is elided
    # (identical value for every batch element); prefixes are laid out
    # lane-dense as (L, P, H*Dh) so their DMA / slicing matches the
    # activation path.
    # TODO(synk): nn.Dropout on prefixes is identity at inference only.
    scale = 1.0 / math.sqrt(Dh)
    wq_b = (wq * scale).astype(jnp.bfloat16)         # fold 1/sqrt(Dh) into Wq
    wk_b = wk.astype(jnp.bfloat16)
    wv_b = wv.astype(jnp.bfloat16)
    wo_b = wo.astype(jnp.bfloat16)
    pk_all = jnp.transpose(prefixes[:, 0], (0, 2, 1, 3)).reshape(L, P, D).astype(jnp.bfloat16)
    pv_all = jnp.transpose(prefixes[:, 1], (0, 2, 1, 3)).reshape(L, P, D).astype(jnp.bfloat16)

    x_in = samples.reshape(num_bt, M, D)             # f32 (carry is exact)

    x_spec = pl.BlockSpec((1, M, D), lambda bt, l: (bt, 0, 0))
    w_spec = pl.BlockSpec((1, D, D), lambda bt, l: (l, 0, 0))
    p_spec = pl.BlockSpec((1, P, D), lambda bt, l: (l, 0, 0))

    kernel = functools.partial(_fused_prefix_backbone_kernel,
                               num_heads=H, head_dim=Dh, seq_len=S)

    flops_per_step = 8 * M * D * D + 4 * M * (S + P) * D
    cost = pl.CostEstimate(
        flops=num_bt * L * flops_per_step,
        transcendentals=num_bt * L * (H * M * (S + P) + M),
        bytes_accessed=(num_bt * L * (4 * D * D + 2 * P * D) * 2   # bf16 weights/prefixes
                        + B * S * D * 4 * 2),                      # f32 in + out
    )

    out = pl.pallas_call(
        kernel,
        out_shape=jax.ShapeDtypeStruct((num_bt, M, D), jnp.float32),
        grid=(num_bt, L),                            # L innermost: layer carry
        in_specs=[x_spec,                            # samples (per batch tile)
                  w_spec, w_spec, w_spec, w_spec,    # per-layer weights (streamed)
                  p_spec, p_spec],                   # per-layer prefixes
        out_specs=x_spec,
        scratch_shapes=[pltpu.VMEM((M, D), jnp.float32),   # layer-carried activation
                        pltpu.VMEM((M, D), jnp.float32)],  # per-layer context slab
        compiler_params=pltpu.CompilerParams(
            dimension_semantics=("parallel", "arbitrary"),
            vmem_limit_bytes=32 * 1024 * 1024),
        cost_estimate=cost,
    )(x_in, wq_b, wk_b, wv_b, wo_b, pk_all, pv_all)

    return out.reshape(B, S, D)


# --------------------------------------------------------------------------
# Pure-JAX reference of the synthetic prefix-attention backbone (f32).
# --------------------------------------------------------------------------
def _reference_forward(samples, params):
    wq, wk, wv, wo = params["wq"], params["wk"], params["wv"], params["wo"]
    prefixes = params["prefixes_base_task"]
    L, _, H, P, Dh = prefixes.shape
    B, S, D = samples.shape
    scale = 1.0 / math.sqrt(Dh)
    x = samples
    for l in range(L):
        q = (x @ wq[l]) * scale
        k = x @ wk[l]
        v = x @ wv[l]
        q = q.reshape(B, S, H, Dh).transpose(0, 2, 1, 3)
        k = k.reshape(B, S, H, Dh).transpose(0, 2, 1, 3)
        v = v.reshape(B, S, H, Dh).transpose(0, 2, 1, 3)
        pk = jnp.broadcast_to(prefixes[l, 0], (B, H, P, Dh))
        pv = jnp.broadcast_to(prefixes[l, 1], (B, H, P, Dh))
        k_full = jnp.concatenate([pk, k], axis=2)
        v_full = jnp.concatenate([pv, v], axis=2)
        s = jnp.einsum('bhqd,bhkd->bhqk', q, k_full)
        p = jax.nn.softmax(s, axis=-1)
        ctx = jnp.einsum('bhqk,bhkd->bhqd', p, v_full)
        ctx = ctx.transpose(0, 2, 1, 3).reshape(B, S, D)
        x = x + ctx @ wo[l]
    return x


def init_params(key, num_layers, d_model, num_heads, head_dim, prefix_len):
    ks = jax.random.split(key, 5)
    std = 0.02
    return {
        # frozen backbone weights
        "wq": std * jax.random.normal(ks[0], (num_layers, d_model, d_model), jnp.float32),
        "wk": std * jax.random.normal(ks[1], (num_layers, d_model, d_model), jnp.float32),
        "wv": std * jax.random.normal(ks[2], (num_layers, d_model, d_model), jnp.float32),
        "wo": std * jax.random.normal(ks[3], (num_layers, d_model, d_model), jnp.float32),
        # trainable prefixes_base_task: [L, 2(kv), H, P, Dh]
        "prefixes_base_task": std * jax.random.normal(
            ks[4], (num_layers, 2, num_heads, prefix_len, head_dim), jnp.float32),
    }


if __name__ == "__main__":
    # small shapes: batch=4, seq=8, hidden=32 (4 heads x 8), prefix_len=4, layers=2
    B, S, D = 4, 8, 32
    H, Dh, P, L = 4, 8, 4, 2

    key = jax.random.PRNGKey(0)
    k_x, k_p = jax.random.split(key)
    samples = jax.random.normal(k_x, (B, S, D), jnp.float32)
    params = init_params(k_p, L, D, H, Dh, P)

    out = supervised_learning_with_prefixes_forward(samples, params)
    out = jax.block_until_ready(out)
    assert out.shape == (B, S, D)
    assert bool(jnp.all(jnp.isfinite(out)))

    # Numerical parity vs f32 reference (bf16 weights/activations in-kernel;
    # loose tolerance documents the expected drift).
    ref = _reference_forward(samples, params)
    assert bool(jnp.allclose(out, ref, rtol=1e-2, atol=1e-2))

    print("KERNEL_OK")
</pallas_src>

<mosaic_0001>
module attributes {stable_mosaic.version = 11 : i64} {
  func.func @_fused_prefix_backbone_kernel(%arg0: i32, %arg1: i32, %arg2: memref<1x32x32xf32, #tpu.memory_space<vmem>>, %arg3: memref<1x32x32xbf16, #tpu.memory_space<vmem>>, %arg4: memref<1x32x32xbf16, #tpu.memory_space<vmem>>, %arg5: memref<1x32x32xbf16, #tpu.memory_space<vmem>>, %arg6: memref<1x32x32xbf16, #tpu.memory_space<vmem>>, %arg7: memref<1x4x32xbf16, #tpu.memory_space<vmem>>, %arg8: memref<1x4x32xbf16, #tpu.memory_space<vmem>>, %arg9: memref<1x32x32xf32, #tpu.memory_space<vmem>>, %arg10: memref<32x32xf32, #tpu.memory_space<vmem>>, %arg11: memref<32x32xf32, #tpu.memory_space<vmem>>) attributes {dimension_semantics = [#tpu.dimension_semantics<parallel>, #tpu.dimension_semantics<arbitrary>], iteration_bounds = array<i64: 1, 2>, scalar_prefetch = 0 : i64, scratch_operands = 2 : i64, tpu.core_type = #tpu.core_type<tc>, window_params = [{transform_indices = @transform_0, window_bounds = array<i64: 1, 32, 32>}, {transform_indices = @transform_1, window_bounds = array<i64: 1, 32, 32>}, {transform_indices = @transform_2, window_bounds = array<i64: 1, 32, 32>}, {transform_indices = @transform_3, window_bounds = array<i64: 1, 32, 32>}, {transform_indices = @transform_4, window_bounds = array<i64: 1, 32, 32>}, {transform_indices = @transform_5, window_bounds = array<i64: 1, 4, 32>}, {transform_indices = @transform_6, window_bounds = array<i64: 1, 4, 32>}, {transform_indices = @transform_7, window_bounds = array<i64: 1, 32, 32>}]} {
    %c0_i32 = arith.constant 0 : i32
    %0 = arith.cmpi eq, %arg1, %c0_i32 : i32
    %1 = arith.extui %0 : i1 to i32
    %c0_i32_0 = arith.constant 0 : i32
    %2 = arith.cmpi ne, %1, %c0_i32_0 : i32
    scf.if %2 {
      %c0_65 = arith.constant 0 : index
      %c0_66 = arith.constant 0 : index
      %c0_67 = arith.constant 0 : index
      %196 = vector.load %arg2[%c0_65, %c0_66, %c0_67] : memref<1x32x32xf32, #tpu.memory_space<vmem>>, vector<1x32x32xf32>
      %197 = vector.shape_cast %196 : vector<1x32x32xf32> to vector<32x32xf32>
      %c0_68 = arith.constant 0 : index
      %c0_69 = arith.constant 0 : index
      %198 = vector.load %arg10[%c0_68, %c0_69] : memref<32x32xf32, #tpu.memory_space<vmem>>, vector<32x32xf32>
      tpu.vector_store %arg10[%c0_68, %c0_69], %197 {strides = array<i32>} : memref<32x32xf32, #tpu.memory_space<vmem>>, vector<32x32xf32>,
    } else {
    }
    %c0 = arith.constant 0 : index
    %c0_1 = arith.constant 0 : index
    %3 = vector.load %arg10[%c0, %c0_1] : memref<32x32xf32, #tpu.memory_space<vmem>>, vector<32x32xf32>
    %4 = arith.truncf %3 : vector<32x32xf32> to vector<32x32xbf16>
    %c0_2 = arith.constant 0 : index
    %c0_3 = arith.constant 0 : index
    %c0_4 = arith.constant 0 : index
    %5 = vector.load %arg3[%c0_2, %c0_3, %c0_4] : memref<1x32x32xbf16, #tpu.memory_space<vmem>>, vector<1x32x32xbf16>
    %6 = vector.shape_cast %5 : vector<1x32x32xbf16> to vector<32x32xbf16>
    %cst = arith.constant dense<0.000000e+00> : vector<32x32xf32>
    %7 = tpu.matmul %4, %6, %cst {dimension_numbers = #tpu.dot_dimension_numbers<[1], [0], [0], [1], [0, 0, 1, 1], [], []>} : vector<32x32xbf16>, vector<32x32xbf16>, vector<32x32xf32> -> vector<32x32xf32>
    %c0_5 = arith.constant 0 : index
    %c0_6 = arith.constant 0 : index
    %c0_7 = arith.constant 0 : index
    %8 = vector.load %arg4[%c0_5, %c0_6, %c0_7] : memref<1x32x32xbf16, #tpu.memory_space<vmem>>, vector<1x32x32xbf16>
    %9 = vector.shape_cast %8 : vector<1x32x32xbf16> to vector<32x32xbf16>
    %cst_8 = arith.constant dense<0.000000e+00> : vector<32x32xf32>
    %10 = tpu.matmul %4, %9, %cst_8 {dimension_numbers = #tpu.dot_dimension_numbers<[1], [0], [0], [1], [0, 0, 1, 1], [], []>} : vector<32x32xbf16>, vector<32x32xbf16>, vector<32x32xf32> -> vector<32x32xf32>
    %c0_9 = arith.constant 0 : index
    %c0_10 = arith.constant 0 : index
    %c0_11 = arith.constant 0 : index
    %11 = vector.load %arg5[%c0_9, %c0_10, %c0_11] : memref<1x32x32xbf16, #tpu.memory_space<vmem>>, vector<1x32x32xbf16>
    %12 = vector.shape_cast %11 : vector<1x32x32xbf16> to vector<32x32xbf16>
    %cst_12 = arith.constant dense<0.000000e+00> : vector<32x32xf32>
    %13 = tpu.matmul %4, %12, %cst_12 {dimension_numbers = #tpu.dot_dimension_numbers<[1], [0], [0], [1], [0, 0, 1, 1], [], []>} : vector<32x32xbf16>, vector<32x32xbf16>, vector<32x32xf32> -> vector<32x32xf32>
    %c0_13 = arith.constant 0 : index
    %c0_14 = arith.constant 0 : index
    %c0_15 = arith.constant 0 : index
    %14 = vector.load %arg7[%c0_13, %c0_14, %c0_15] : memref<1x4x32xbf16, #tpu.memory_space<vmem>>, vector<1x4x32xbf16>
    %15 = vector.shape_cast %14 : vector<1x4x32xbf16> to vector<4x32xbf16>
    %c0_16 = arith.constant 0 : index
    %c0_17 = arith.constant 0 : index
    %c0_18 = arith.constant 0 : index
    %16 = vector.load %arg8[%c0_16, %c0_17, %c0_18] : memref<1x4x32xbf16, #tpu.memory_space<vmem>>, vector<1x4x32xbf16>
    %17 = vector.shape_cast %16 : vector<1x4x32xbf16> to vector<4x32xbf16>
    %18 = vector.extract_strided_slice %7 {offsets = [0, 0], sizes = [32, 8], strides = [1, 1]} : vector<32x32xf32> to vector<32x8xf32>
    %19 = arith.truncf %18 : vector<32x8xf32> to vector<32x8xbf16>
    %20 = vector.extract_strided_slice %10 {offsets = [0, 0], sizes = [32, 8], strides = [1, 1]} : vector<32x32xf32> to vector<32x8xf32>
    %21 = arith.truncf %20 : vector<32x8xf32> to vector<32x8xbf16>
    %22 = vector.extract_strided_slice %13 {offsets = [0, 0], sizes = [32, 8], strides = [1, 1]} : vector<32x32xf32> to vector<32x8xf32>
    %23 = arith.truncf %22 : vector<32x8xf32> to vector<32x8xbf16>
    %24 = vector.extract_strided_slice %15 {offsets = [0, 0], sizes = [4, 8], strides = [1, 1]} : vector<4x32xbf16> to vector<4x8xbf16>
    %25 = vector.extract_strided_slice %17 {offsets = [0, 0], sizes = [4, 8], strides = [1, 1]} : vector<4x32xbf16> to vector<4x8xbf16>
    %cst_19 = arith.constant dense<0.000000e+00> : vector<32x4xf32>
    %26 = tpu.matmul %19, %24, %cst_19 {dimension_numbers = #tpu.dot_dimension_numbers<[1], [1], [0], [0], [0, 0, 1, 0], [], []>} : vector<32x8xbf16>, vector<4x8xbf16>, vector<32x4xf32> -> vector<32x4xf32>
    %27 = vector.shape_cast %19 : vector<32x8xbf16> to vector<4x8x8xbf16>
    %28 = vector.shape_cast %21 : vector<32x8xbf16> to vector<4x8x8xbf16>
    %29 = vector.shape_cast %23 : vector<32x8xbf16> to vector<4x8x8xbf16>
    "tpu.trace_start"() <{level = 10 : i32, message = "bqd,bkd->bqk"}> : () -> ()
    %cst_20 = arith.constant dense<0.000000e+00> : vector<4x8x8xf32>
    %30 = tpu.matmul %27, %28, %cst_20 {dimension_numbers = #tpu.dot_dimension_numbers<[2], [2], [1], [1], [0, 0, 0, 1, 1, 1], [0], [0]>} : vector<4x8x8xbf16>, vector<4x8x8xbf16>, vector<4x8x8xf32> -> vector<4x8x8xf32>
    "tpu.trace_stop"() : () -> ()
    %31 = vector.shape_cast %26 : vector<32x4xf32> to vector<4x8x4xf32>
    %cst_21 = arith.constant dense<0xFF800000> : vector<4x8xf32>
    %32 = vector.multi_reduction <maximumf>, %31, %cst_21 [2] : vector<4x8x4xf32> to vector<4x8xf32>
    %33 = vector.shape_cast %32 : vector<4x8xf32> to vector<4x8x1xf32>
    %cst_22 = arith.constant dense<0xFF800000> : vector<4x8xf32>
    %34 = vector.multi_reduction <maximumf>, %30, %cst_22 [2] : vector<4x8x8xf32> to vector<4x8xf32>
    %35 = vector.shape_cast %34 : vector<4x8xf32> to vector<4x8x1xf32>
    %36 = arith.maximumf %33, %35 : vector<4x8x1xf32>
    %37 = vector.broadcast %36 : vector<4x8x1xf32> to vector<4x8x4xf32>
    %38 = arith.subf %31, %37 : vector<4x8x4xf32>
    %39 = math.exp %38 : vector<4x8x4xf32>
    %40 = vector.broadcast %36 : vector<4x8x1xf32> to vector<4x8x8xf32>
    %41 = arith.subf %30, %40 : vector<4x8x8xf32>
    %42 = math.exp %41 : vector<4x8x8xf32>
    %cst_23 = arith.constant dense<0.000000e+00> : vector<4x8xf32>
    %43 = vector.multi_reduction <add>, %39, %cst_23 [2] : vector<4x8x4xf32> to vector<4x8xf32>
    %44 = vector.shape_cast %43 : vector<4x8xf32> to vector<4x8x1xf32>
    %cst_24 = arith.constant dense<0.000000e+00> : vector<4x8xf32>
    %45 = vector.multi_reduction <add>, %42, %cst_24 [2] : vector<4x8x8xf32> to vector<4x8xf32>
    %46 = vector.shape_cast %45 : vector<4x8xf32> to vector<4x8x1xf32>
    %47 = arith.addf %44, %46 : vector<4x8x1xf32>
    %48 = tpu.reciprocal %47 : vector<4x8x1xf32> -> vector<4x8x1xf32>
    %49 = vector.shape_cast %39 : vector<4x8x4xf32> to vector<32x4xf32>
    %50 = arith.truncf %49 : vector<32x4xf32> to vector<32x4xbf16>
    %cst_25 = arith.constant dense<0.000000e+00> : vector<32x8xf32>
    %51 = tpu.matmul %50, %25, %cst_25 {dimension_numbers = #tpu.dot_dimension_numbers<[1], [0], [0], [1], [0, 0, 1, 1], [], []>} : vector<32x4xbf16>, vector<4x8xbf16>, vector<32x8xf32> -> vector<32x8xf32>
    %52 = arith.truncf %42 : vector<4x8x8xf32> to vector<4x8x8xbf16>
    "tpu.trace_start"() <{level = 10 : i32, message = "bqk,bkd->bqd"}> : () -> ()
    %cst_26 = arith.constant dense<0.000000e+00> : vector<4x8x8xf32>
    %53 = tpu.matmul %52, %29, %cst_26 {dimension_numbers = #tpu.dot_dimension_numbers<[2], [1], [1], [2], [0, 0, 0, 1, 1, 2], [0], [0]>} : vector<4x8x8xbf16>, vector<4x8x8xbf16>, vector<4x8x8xf32> -> vector<4x8x8xf32>
    "tpu.trace_stop"() : () -> ()
    %54 = vector.shape_cast %53 : vector<4x8x8xf32> to vector<32x8xf32>
    %55 = arith.addf %51, %54 : vector<32x8xf32>
    %56 = vector.shape_cast %48 : vector<4x8x1xf32> to vector<32x1xf32>
    %57 = vector.broadcast %56 : vector<32x1xf32> to vector<32x8xf32>
    %58 = arith.mulf %55, %57 : vector<32x8xf32>
    %c0_27 = arith.constant 0 : index
    %c0_28 = arith.constant 0 : index
    %59 = vector.load %arg11[%c0_27, %c0_28] : memref<32x32xf32, #tpu.memory_space<vmem>>, vector<32x8xf32>
    tpu.vector_store %arg11[%c0_27, %c0_28], %58 {strides = array<i32>} : memref<32x32xf32, #tpu.memory_space<vmem>>, vector<32x8xf32>,
    %60 = vector.extract_strided_slice %7 {offsets = [0, 8], sizes = [32, 8], strides = [1, 1]} : vector<32x32xf32> to vector<32x8xf32>
    %61 = arith.truncf %60 : vector<32x8xf32> to vector<32x8xbf16>
    %62 = vector.extract_strided_slice %10 {offsets = [0, 8], sizes = [32, 8], strides = [1, 1]} : vector<32x32xf32> to vector<32x8xf32>
    %63 = arith.truncf %62 : vector<32x8xf32> to vector<32x8xbf16>
    %64 = vector.extract_strided_slice %13 {offsets = [0, 8], sizes = [32, 8], strides = [1, 1]} : vector<32x32xf32> to vector<32x8xf32>
    %65 = arith.truncf %64 : vector<32x8xf32> to vector<32x8xbf16>
    %66 = vector.extract_strided_slice %15 {offsets = [0, 8], sizes = [4, 8], strides = [1, 1]} : vector<4x32xbf16> to vector<4x8xbf16>
    %67 = vector.extract_strided_slice %17 {offsets = [0, 8], sizes = [4, 8], strides = [1, 1]} : vector<4x32xbf16> to vector<4x8xbf16>
    %cst_29 = arith.constant dense<0.000000e+00> : vector<32x4xf32>
    %68 = tpu.matmul %61, %66, %cst_29 {dimension_numbers = #tpu.dot_dimension_numbers<[1], [1], [0], [0], [0, 0, 1, 0], [], []>} : vector<32x8xbf16>, vector<4x8xbf16>, vector<32x4xf32> -> vector<32x4xf32>
    %69 = vector.shape_cast %61 : vector<32x8xbf16> to vector<4x8x8xbf16>
    %70 = vector.shape_cast %63 : vector<32x8xbf16> to vector<4x8x8xbf16>
    %71 = vector.shape_cast %65 : vector<32x8xbf16> to vector<4x8x8xbf16>
    "tpu.trace_start"() <{level = 10 : i32, message = "bqd,bkd->bqk"}> : () -> ()
    %cst_30 = arith.constant dense<0.000000e+00> : vector<4x8x8xf32>
    %72 = tpu.matmul %69, %70, %cst_30 {dimension_numbers = #tpu.dot_dimension_numbers<[2], [2], [1], [1], [0, 0, 0, 1, 1, 1], [0], [0]>} : vector<4x8x8xbf16>, vector<4x8x8xbf16>, vector<4x8x8xf32> -> vector<4x8x8xf32>
    "tpu.trace_stop"() : () -> ()
    %73 = vector.shape_cast %68 : vector<32x4xf32> to vector<4x8x4xf32>
    %cst_31 = arith.constant dense<0xFF800000> : vector<4x8xf32>
    %74 = vector.multi_reduction <maximumf>, %73, %cst_31 [2] : vector<4x8x4xf32> to vector<4x8xf32>
    %75 = vector.shape_cast %74 : vector<4x8xf32> to vector<4x8x1xf32>
    %cst_32 = arith.constant dense<0xFF800000> : vector<4x8xf32>
    %76 = vector.multi_reduction <maximumf>, %72, %cst_32 [2] : vector<4x8x8xf32> to vector<4x8xf32>
    %77 = vector.shape_cast %76 : vector<4x8xf32> to vector<4x8x1xf32>
    %78 = arith.maximumf %75, %77 : vector<4x8x1xf32>
    %79 = vector.broadcast %78 : vector<4x8x1xf32> to vector<4x8x4xf32>
    %80 = arith.subf %73, %79 : vector<4x8x4xf32>
    %81 = math.exp %80 : vector<4x8x4xf32>
    %82 = vector.broadcast %78 : vector<4x8x1xf32> to vector<4x8x8xf32>
    %83 = arith.subf %72, %82 : vector<4x8x8xf32>
    %84 = math.exp %83 : vector<4x8x8xf32>
    %cst_33 = arith.constant dense<0.000000e+00> : vector<4x8xf32>
    %85 = vector.multi_reduction <add>, %81, %cst_33 [2] : vector<4x8x4xf32> to vector<4x8xf32>
    %86 = vector.shape_cast %85 : vector<4x8xf32> to vector<4x8x1xf32>
    %cst_34 = arith.constant dense<0.000000e+00> : vector<4x8xf32>
    %87 = vector.multi_reduction <add>, %84, %cst_34 [2] : vector<4x8x8xf32> to vector<4x8xf32>
    %88 = vector.shape_cast %87 : vector<4x8xf32> to vector<4x8x1xf32>
    %89 = arith.addf %86, %88 : vector<4x8x1xf32>
    %90 = tpu.reciprocal %89 : vector<4x8x1xf32> -> vector<4x8x1xf32>
    %91 = vector.shape_cast %81 : vector<4x8x4xf32> to vector<32x4xf32>
    %92 = arith.truncf %91 : vector<32x4xf32> to vector<32x4xbf16>
    %cst_35 = arith.constant dense<0.000000e+00> : vector<32x8xf32>
    %93 = tpu.matmul %92, %67, %cst_35 {dimension_numbers = #tpu.dot_dimension_numbers<[1], [0], [0], [1], [0, 0, 1, 1], [], []>} : vector<32x4xbf16>, vector<4x8xbf16>, vector<32x8xf32> -> vector<32x8xf32>
    %94 = arith.truncf %84 : vector<4x8x8xf32> to vector<4x8x8xbf16>
    "tpu.trace_start"() <{level = 10 : i32, message = "bqk,bkd->bqd"}> : () -> ()
    %cst_36 = arith.constant dense<0.000000e+00> : vector<4x8x8xf32>
    %95 = tpu.matmul %94, %71, %cst_36 {dimension_numbers = #tpu.dot_dimension_numbers<[2], [1], [1], [2], [0, 0, 0, 1, 1, 2], [0], [0]>} : vector<4x8x8xbf16>, vector<4x8x8xbf16>, vector<4x8x8xf32> -> vector<4x8x8xf32>
    "tpu.trace_stop"() : () -> ()
    %96 = vector.shape_cast %95 : vector<4x8x8xf32> to vector<32x8xf32>
    %97 = arith.addf %93, %96 : vector<32x8xf32>
    %98 = vector.shape_cast %90 : vector<4x8x1xf32> to vector<32x1xf32>
    %99 = vector.broadcast %98 : vector<32x1xf32> to vector<32x8xf32>
    %100 = arith.mulf %97, %99 : vector<32x8xf32>
    %c0_37 = arith.constant 0 : index
    %c8 = arith.constant 8 : index
    %101 = vector.load %arg11[%c0_37, %c8] : memref<32x32xf32, #tpu.memory_space<vmem>>, vector<32x8xf32>
    tpu.vector_store %arg11[%c0_37, %c8], %100 {strides = array<i32>} : memref<32x32xf32, #tpu.memory_space<vmem>>, vector<32x8xf32>,
    %102 = vector.extract_strided_slice %7 {offsets = [0, 16], sizes = [32, 8], strides = [1, 1]} : vector<32x32xf32> to vector<32x8xf32>
    %103 = arith.truncf %102 : vector<32x8xf32> to vector<32x8xbf16>
    %104 = vector.extract_strided_slice %10 {offsets = [0, 16], sizes = [32, 8], strides = [1, 1]} : vector<32x32xf32> to vector<32x8xf32>
    %105 = arith.truncf %104 : vector<32x8xf32> to vector<32x8xbf16>
    %106 = vector.extract_strided_slice %13 {offsets = [0, 16], sizes = [32, 8], strides = [1, 1]} : vector<32x32xf32> to vector<32x8xf32>
    %107 = arith.truncf %106 : vector<32x8xf32> to vector<32x8xbf16>
    %108 = vector.extract_strided_slice %15 {offsets = [0, 16], sizes = [4, 8], strides = [1, 1]} : vector<4x32xbf16> to vector<4x8xbf16>
    %109 = vector.extract_strided_slice %17 {offsets = [0, 16], sizes = [4, 8], strides = [1, 1]} : vector<4x32xbf16> to vector<4x8xbf16>
    %cst_38 = arith.constant dense<0.000000e+00> : vector<32x4xf32>
    %110 = tpu.matmul %103, %108, %cst_38 {dimension_numbers = #tpu.dot_dimension_numbers<[1], [1], [0], [0], [0, 0, 1, 0], [], []>} : vector<32x8xbf16>, vector<4x8xbf16>, vector<32x4xf32> -> vector<32x4xf32>
    %111 = vector.shape_cast %103 : vector<32x8xbf16> to vector<4x8x8xbf16>
    %112 = vector.shape_cast %105 : vector<32x8xbf16> to vector<4x8x8xbf16>
    %113 = vector.shape_cast %107 : vector<32x8xbf16> to vector<4x8x8xbf16>
    "tpu.trace_start"() <{level = 10 : i32, message = "bqd,bkd->bqk"}> : () -> ()
    %cst_39 = arith.constant dense<0.000000e+00> : vector<4x8x8xf32>
    %114 = tpu.matmul %111, %112, %cst_39 {dimension_numbers = #tpu.dot_dimension_numbers<[2], [2], [1], [1], [0, 0, 0, 1, 1, 1], [0], [0]>} : vector<4x8x8xbf16>, vector<4x8x8xbf16>, vector<4x8x8xf32> -> vector<4x8x8xf32>
    "tpu.trace_stop"() : () -> ()
    %115 = vector.shape_cast %110 : vector<32x4xf32> to vector<4x8x4xf32>
    %cst_40 = arith.constant dense<0xFF800000> : vector<4x8xf32>
    %116 = vector.multi_reduction <maximumf>, %115, %cst_40 [2] : vector<4x8x4xf32> to vector<4x8xf32>
    %117 = vector.shape_cast %116 : vector<4x8xf32> to vector<4x8x1xf32>
    %cst_41 = arith.constant dense<0xFF800000> : vector<4x8xf32>
    %118 = vector.multi_reduction <maximumf>, %114, %cst_41 [2] : vector<4x8x8xf32> to vector<4x8xf32>
    %119 = vector.shape_cast %118 : vector<4x8xf32> to vector<4x8x1xf32>
    %120 = arith.maximumf %117, %119 : vector<4x8x1xf32>
    %121 = vector.broadcast %120 : vector<4x8x1xf32> to vector<4x8x4xf32>
    %122 = arith.subf %115, %121 : vector<4x8x4xf32>
    %123 = math.exp %122 : vector<4x8x4xf32>
    %124 = vector.broadcast %120 : vector<4x8x1xf32> to vector<4x8x8xf32>
    %125 = arith.subf %114, %124 : vector<4x8x8xf32>
    %126 = math.exp %125 : vector<4x8x8xf32>
    %cst_42 = arith.constant dense<0.000000e+00> : vector<4x8xf32>
    %127 = vector.multi_reduction <add>, %123, %cst_42 [2] : vector<4x8x4xf32> to vector<4x8xf32>
    %128 = vector.shape_cast %127 : vector<4x8xf32> to vector<4x8x1xf32>
    %cst_43 = arith.constant dense<0.000000e+00> : vector<4x8xf32>
    %129 = vector.multi_reduction <add>, %126, %cst_43 [2] : vector<4x8x8xf32> to vector<4x8xf32>
    %130 = vector.shape_cast %129 : vector<4x8xf32> to vector<4x8x1xf32>
    %131 = arith.addf %128, %130 : vector<4x8x1xf32>
    %132 = tpu.reciprocal %131 : vector<4x8x1xf32> -> vector<4x8x1xf32>
    %133 = vector.shape_cast %123 : vector<4x8x4xf32> to vector<32x4xf32>
    %134 = arith.truncf %133 : vector<32x4xf32> to vector<32x4xbf16>
    %cst_44 = arith.constant dense<0.000000e+00> : vector<32x8xf32>
    %135 = tpu.matmul %134, %109, %cst_44 {dimension_numbers = #tpu.dot_dimension_numbers<[1], [0], [0], [1], [0, 0, 1, 1], [], []>} : vector<32x4xbf16>, vector<4x8xbf16>, vector<32x8xf32> -> vector<32x8xf32>
    %136 = arith.truncf %126 : vector<4x8x8xf32> to vector<4x8x8xbf16>
    "tpu.trace_start"() <{level = 10 : i32, message = "bqk,bkd->bqd"}> : () -> ()
    %cst_45 = arith.constant dense<0.000000e+00> : vector<4x8x8xf32>
    %137 = tpu.matmul %136, %113, %cst_45 {dimension_numbers = #tpu.dot_dimension_numbers<[2], [1], [1], [2], [0, 0, 0, 1, 1, 2], [0], [0]>} : vector<4x8x8xbf16>, vector<4x8x8xbf16>, vector<4x8x8xf32> -> vector<4x8x8xf32>
    "tpu.trace_stop"() : () -> ()
    %138 = vector.shape_cast %137 : vector<4x8x8xf32> to vector<32x8xf32>
    %139 = arith.addf %135, %138 : vector<32x8xf32>
    %140 = vector.shape_cast %132 : vector<4x8x1xf32> to vector<32x1xf32>
    %141 = vector.broadcast %140 : vector<32x1xf32> to vector<32x8xf32>
    %142 = arith.mulf %139, %141 : vector<32x8xf32>
    %c0_46 = arith.constant 0 : index
    %c16 = arith.constant 16 : index
    %143 = vector.load %arg11[%c0_46, %c16] : memref<32x32xf32, #tpu.memory_space<vmem>>, vector<32x8xf32>
    tpu.vector_store %arg11[%c0_46, %c16], %142 {strides = array<i32>} : memref<32x32xf32, #tpu.memory_space<vmem>>, vector<32x8xf32>,
    %144 = vector.extract_strided_slice %7 {offsets = [0, 24], sizes = [32, 8], strides = [1, 1]} : vector<32x32xf32> to vector<32x8xf32>
    %145 = arith.truncf %144 : vector<32x8xf32> to vector<32x8xbf16>
    %146 = vector.extract_strided_slice %10 {offsets = [0, 24], sizes = [32, 8], strides = [1, 1]} : vector<32x32xf32> to vector<32x8xf32>
    %147 = arith.truncf %146 : vector<32x8xf32> to vector<32x8xbf16>
    %148 = vector.extract_strided_slice %13 {offsets = [0, 24], sizes = [32, 8], strides = [1, 1]} : vector<32x32xf32> to vector<32x8xf32>
    %149 = arith.truncf %148 : vector<32x8xf32> to vector<32x8xbf16>
    %150 = vector.extract_strided_slice %15 {offsets = [0, 24], sizes = [4, 8], strides = [1, 1]} : vector<4x32xbf16> to vector<4x8xbf16>
    %151 = vector.extract_strided_slice %17 {offsets = [0, 24], sizes = [4, 8], strides = [1, 1]} : vector<4x32xbf16> to vector<4x8xbf16>
    %cst_47 = arith.constant dense<0.000000e+00> : vector<32x4xf32>
    %152 = tpu.matmul %145, %150, %cst_47 {dimension_numbers = #tpu.dot_dimension_numbers<[1], [1], [0], [0], [0, 0, 1, 0], [], []>} : vector<32x8xbf16>, vector<4x8xbf16>, vector<32x4xf32> -> vector<32x4xf32>
    %153 = vector.shape_cast %145 : vector<32x8xbf16> to vector<4x8x8xbf16>
    %154 = vector.shape_cast %147 : vector<32x8xbf16> to vector<4x8x8xbf16>
    %155 = vector.shape_cast %149 : vector<32x8xbf16> to vector<4x8x8xbf16>
    "tpu.trace_start"() <{level = 10 : i32, message = "bqd,bkd->bqk"}> : () -> ()
    %cst_48 = arith.constant dense<0.000000e+00> : vector<4x8x8xf32>
    %156 = tpu.matmul %153, %154, %cst_48 {dimension_numbers = #tpu.dot_dimension_numbers<[2], [2], [1], [1], [0, 0, 0, 1, 1, 1], [0], [0]>} : vector<4x8x8xbf16>, vector<4x8x8xbf16>, vector<4x8x8xf32> -> vector<4x8x8xf32>
    "tpu.trace_stop"() : () -> ()
    %157 = vector.shape_cast %152 : vector<32x4xf32> to vector<4x8x4xf32>
    %cst_49 = arith.constant dense<0xFF800000> : vector<4x8xf32>
    %158 = vector.multi_reduction <maximumf>, %157, %cst_49 [2] : vector<4x8x4xf32> to vector<4x8xf32>
    %159 = vector.shape_cast %158 : vector<4x8xf32> to vector<4x8x1xf32>
    %cst_50 = arith.constant dense<0xFF800000> : vector<4x8xf32>
    %160 = vector.multi_reduction <maximumf>, %156, %cst_50 [2] : vector<4x8x8xf32> to vector<4x8xf32>
    %161 = vector.shape_cast %160 : vector<4x8xf32> to vector<4x8x1xf32>
    %162 = arith.maximumf %159, %161 : vector<4x8x1xf32>
    %163 = vector.broadcast %162 : vector<4x8x1xf32> to vector<4x8x4xf32>
    %164 = arith.subf %157, %163 : vector<4x8x4xf32>
    %165 = math.exp %164 : vector<4x8x4xf32>
    %166 = vector.broadcast %162 : vector<4x8x1xf32> to vector<4x8x8xf32>
    %167 = arith.subf %156, %166 : vector<4x8x8xf32>
    %168 = math.exp %167 : vector<4x8x8xf32>
    %cst_51 = arith.constant dense<0.000000e+00> : vector<4x8xf32>
    %169 = vector.multi_reduction <add>, %165, %cst_51 [2] : vector<4x8x4xf32> to vector<4x8xf32>
    %170 = vector.shape_cast %169 : vector<4x8xf32> to vector<4x8x1xf32>
    %cst_52 = arith.constant dense<0.000000e+00> : vector<4x8xf32>
    %171 = vector.multi_reduction <add>, %168, %cst_52 [2] : vector<4x8x8xf32> to vector<4x8xf32>
    %172 = vector.shape_cast %171 : vector<4x8xf32> to vector<4x8x1xf32>
    %173 = arith.addf %170, %172 : vector<4x8x1xf32>
    %174 = tpu.reciprocal %173 : vector<4x8x1xf32> -> vector<4x8x1xf32>
    %175 = vector.shape_cast %165 : vector<4x8x4xf32> to vector<32x4xf32>
    %176 = arith.truncf %175 : vector<32x4xf32> to vector<32x4xbf16>
    %cst_53 = arith.constant dense<0.000000e+00> : vector<32x8xf32>
    %177 = tpu.matmul %176, %151, %cst_53 {dimension_numbers = #tpu.dot_dimension_numbers<[1], [0], [0], [1], [0, 0, 1, 1], [], []>} : vector<32x4xbf16>, vector<4x8xbf16>, vector<32x8xf32> -> vector<32x8xf32>
    %178 = arith.truncf %168 : vector<4x8x8xf32> to vector<4x8x8xbf16>
    "tpu.trace_start"() <{level = 10 : i32, message = "bqk,bkd->bqd"}> : () -> ()
    %cst_54 = arith.constant dense<0.000000e+00> : vector<4x8x8xf32>
    %179 = tpu.matmul %178, %155, %cst_54 {dimension_numbers = #tpu.dot_dimension_numbers<[2], [1], [1], [2], [0, 0, 0, 1, 1, 2], [0], [0]>} : vector<4x8x8xbf16>, vector<4x8x8xbf16>, vector<4x8x8xf32> -> vector<4x8x8xf32>
    "tpu.trace_stop"() : () -> ()
    %180 = vector.shape_cast %179 : vector<4x8x8xf32> to vector<32x8xf32>
    %181 = arith.addf %177, %180 : vector<32x8xf32>
    %182 = vector.shape_cast %174 : vector<4x8x1xf32> to vector<32x1xf32>
    %183 = vector.broadcast %182 : vector<32x1xf32> to vector<32x8xf32>
    %184 = arith.mulf %181, %183 : vector<32x8xf32>
    %c0_55 = arith.constant 0 : index
    %c24 = arith.constant 24 : index
    %185 = vector.load %arg11[%c0_55, %c24] : memref<32x32xf32, #tpu.memory_space<vmem>>, vector<32x8xf32>
    tpu.vector_store %arg11[%c0_55, %c24], %184 {strides = array<i32>} : memref<32x32xf32, #tpu.memory_space<vmem>>, vector<32x8xf32>,
    %c0_56 = arith.constant 0 : index
    %c0_57 = arith.constant 0 : index
    %186 = vector.load %arg11[%c0_56, %c0_57] : memref<32x32xf32, #tpu.memory_space<vmem>>, vector<32x32xf32>
    %187 = arith.truncf %186 : vector<32x32xf32> to vector<32x32xbf16>
    %c0_58 = arith.constant 0 : index
    %c0_59 = arith.constant 0 : index
    %c0_60 = arith.constant 0 : index
    %188 = vector.load %arg6[%c0_58, %c0_59, %c0_60] : memref<1x32x32xbf16, #tpu.memory_space<vmem>>, vector<1x32x32xbf16>
    %189 = vector.shape_cast %188 : vector<1x32x32xbf16> to vector<32x32xbf16>
    %cst_61 = arith.constant dense<0.000000e+00> : vector<32x32xf32>
    %190 = tpu.matmul %187, %189, %cst_61 {dimension_numbers = #tpu.dot_dimension_numbers<[1], [0], [0], [1], [0, 0, 1, 1], [], []>} : vector<32x32xbf16>, vector<32x32xbf16>, vector<32x32xf32> -> vector<32x32xf32>
    %191 = arith.addf %3, %190 : vector<32x32xf32>
    %c0_62 = arith.constant 0 : index
    %c0_63 = arith.constant 0 : index
    %192 = vector.load %arg10[%c0_62, %c0_63] : memref<32x32xf32, #tpu.memory_space<vmem>>, vector<32x32xf32>
    tpu.vector_store %arg10[%c0_62, %c0_63], %191 {strides = array<i32>} : memref<32x32xf32, #tpu.memory_space<vmem>>, vector<32x32xf32>,
    %c1_i32 = arith.constant 1 : i32
    %193 = arith.cmpi eq, %arg1, %c1_i32 : i32
    %194 = arith.extui %193 : i1 to i32
    %c0_i32_64 = arith.constant 0 : i32
    %195 = arith.cmpi ne, %194, %c0_i32_64 : i32
    scf.if %195 {
      %c0_65 = arith.constant 0 : index
      %c0_66 = arith.constant 0 : index
      %c0_67 = arith.constant 0 : index
      %196 = vector.load %arg9[%c0_65, %c0_66, %c0_67] : memref<1x32x32xf32, #tpu.memory_space<vmem>>, vector<1x32x32xf32>
      %197 = vector.shape_cast %196 : vector<1x32x32xf32> to vector<32x32xf32>
      %198 = vector.shape_cast %191 : vector<32x32xf32> to vector<1x32x32xf32>
      tpu.vector_store %arg9[%c0_65, %c0_66, %c0_67], %198 {strides = array<i32>} : memref<1x32x32xf32, #tpu.memory_space<vmem>>, vector<1x32x32xf32>,
    } else {
    }
    return
  }
  func.func @transform_0(%arg0: i32, %arg1: i32) -> (i32, i32, i32) {
    %c0_i32 = arith.constant 0 : i32
    %c0_i32_0 = arith.constant 0 : i32
    %c0_i32_1 = arith.constant 0 : i32
    return %arg0, %c0_i32, %c0_i32_0 : i32, i32, i32
  }
  func.func @transform_1(%arg0: i32, %arg1: i32) -> (i32, i32, i32) {
    %c0_i32 = arith.constant 0 : i32
    %c0_i32_0 = arith.constant 0 : i32
    %c0_i32_1 = arith.constant 0 : i32
    return %arg1, %c0_i32, %c0_i32_0 : i32, i32, i32
  }
  func.func @transform_2(%arg0: i32, %arg1: i32) -> (i32, i32, i32) {
    %c0_i32 = arith.constant 0 : i32
    %c0_i32_0 = arith.constant 0 : i32
    %c0_i32_1 = arith.constant 0 : i32
    return %arg1, %c0_i32, %c0_i32_0 : i32, i32, i32
  }
  func.func @transform_3(%arg0: i32, %arg1: i32) -> (i32, i32, i32) {
    %c0_i32 = arith.constant 0 : i32
    %c0_i32_0 = arith.constant 0 : i32
    %c0_i32_1 = arith.constant 0 : i32
    return %arg1, %c0_i32, %c0_i32_0 : i32, i32, i32
  }
  func.func @transform_4(%arg0: i32, %arg1: i32) -> (i32, i32, i32) {
    %c0_i32 = arith.constant 0 : i32
    %c0_i32_0 = arith.constant 0 : i32
    %c0_i32_1 = arith.constant 0 : i32
    return %arg1, %c0_i32, %c0_i32_0 : i32, i32, i32
  }
  func.func @transform_5(%arg0: i32, %arg1: i32) -> (i32, i32, i32) {
    %c0_i32 = arith.constant 0 : i32
    %c0_i32_0 = arith.constant 0 : i32
    %c0_i32_1 = arith.constant 0 : i32
    return %arg1, %c0_i32, %c0_i32_0 : i32, i32, i32
  }
  func.func @transform_6(%arg0: i32, %arg1: i32) -> (i32, i32, i32) {
    %c0_i32 = arith.constant 0 : i32
    %c0_i32_0 = arith.constant 0 : i32
    %c0_i32_1 = arith.constant 0 : i32
    return %arg1, %c0_i32, %c0_i32_0 : i32, i32, i32
  }
  func.func @transform_7(%arg0: i32, %arg1: i32) -> (i32, i32, i32) {
    %c0_i32 = arith.constant 0 : i32
    %c0_i32_0 = arith.constant 0 : i32
    %c0_i32_1 = arith.constant 0 : i32
    return %arg0, %c0_i32, %c0_i32_0 : i32, i32, i32
  }
}

</mosaic_0001>

<bundles_post_ra>
// kernel: tpu_custom_call.1
= control target key start
LH: loop header
LB: loop body
LE: loop exit
PB: predicated region body
PF: predicated region fallthrough
CT: control target
= control target key end

     0   :  { %s5419_s0 = inlined_call_operand.hbm [shape: f32[1,32,32], index: 0, kind: input, shape index: {}]   ;;  %s5420_s1 = inlined_call_operand.hbm [shape: bf16[2,32,32], index: 1, kind: input, shape index: {}]   ;;  %s5421_s2 = inlined_call_operand.hbm [shape: bf16[2,32,32], index: 2, kind: input, shape index: {}]   ;;  %s5422_s3 = inlined_call_operand.hbm [shape: bf16[2,32,32], index: 3, kind: input, shape index: {}]   ;;  %s5423_s4 = inlined_call_operand.hbm [shape: bf16[2,32,32], index: 4, kind: input, shape index: {}]   ;;  %s5424_s5 = inlined_call_operand.vmem [shape: bf16[2,4,32], index: 5, kind: input, shape index: {}]   ;;  %s5425_s6 = inlined_call_operand.vmem [shape: bf16[2,4,32], index: 6, kind: input, shape index: {}]   ;;  %s5426_s7 = inlined_call_operand.hbm [shape: f32[1,32,32], index: 7, kind: output, shape index: {}]  }
   0x1   :  { %5433 = sst [smem:[#allocation20_spill]] %s5419_s0 }
   0x2   :  { %5434 = sst [smem:[#allocation21_spill]] %s5420_s1 }
   0x3   :  { %12 = vsyncpa [#allocation5], 0 }
   0x4   :  { %13 = vsyncpa [#allocation8], 0 }
   0x5   :  { %15 = vsyncpa [#allocation8 + $0x1], 0 }
   0x6   :  { %16 = vsyncpa [#allocation11], 0 }
   0x7   :  { %18 = vsyncpa [#allocation11 + $0x1], 0 }
   0x8   :  { %19 = vsyncpa [#allocation6], 0  ;;  %s4497_s24 = smov 0   ;;  %s4499_s25 = smov 0  }
   0x9   :  { %s4501_s26 = smov 0   ;;  %s4503_s27 = smov 0  }
   0xa   :  { %s4505_s28 = smov 0   ;;  %s4507_s29 = smov 0  }
   0xb LB: > { %5435 = sst [smem:[#allocation18_spill]] %s4431_s28  ;;  %s34_s30 = sadd.s32 1, %s4431_s28  ;;  %s4435_s29 = sphi %s4507_s29, %s25_s29   ;;  %s4431_s28 = sphi %s4505_s28, %s5448_s28   ;;  %s4427_s27 = sphi %s4503_s27, %s5447_s27   ;;  %s4423_s26 = sphi %s4501_s26, %s5451_s26   ;;  %s4419_s25 = sphi %s4499_s25, %s5450_s25   ;;  %s4415_s24 = sphi %s4497_s24, %s5449_s24  }
   0xc   : > { %s70_s8 = sadd.s32 1, %s4423_s26  ;;  %p35_p0 = scmp.ge.s32.totalorder %s34_s30, 2 }
   0xd   : > { %p77_p1 = scmp.ne.s32.totalorder %s4423_s26, %s4419_s25  ;;  %p78_p2 = scmp.eq.s32.totalorder %s4435_s29, 0 }
   0xe   : > { %s5453_s30 = smov (%p35_p0, %s34_s30), 0  ;;  %p4035_p4 = scmp.lt.s32.totalorder %s4435_s29, 2 }
   0xf   : > { %5436 = sst [smem:[#allocation19_spill]] %s5453_s30  ;;  %p79_p3 = por %p78_p2, %p77_p1 }
  0x10   : > { %s67_s9 = ssub.s32 %s4431_s28, %s5453_s30  ;;  %s279_s10 = sand.u32 1, %s4435_s29  }
  0x11   : > { %p68_p5 = scmp.eq.s32.totalorder %s67_s9, 0  ;;  %s281_s11 = sand.u32 1, %s4423_s26  }
  0x12   : > { %s4540_s12 = sshll.u32 %s4431_s28, 8  ;;  %s4545_s14 = sshll.u32 %s281_s11, 4 }
  0x13   : > { %s4543_s13 = scalar_select %p68_p5, %s4423_s26, %s70_s8  }
  0x14   : > { %s5437_s1 = sld [smem:[#allocation21_spill]]  ;;  %p4551_p6 = pnand %p4035_p4, %p79_p3 }
  0x15   : > { %s283_s19 = scalar_lea.vmem [#allocation7], %s4545_s14  ;;  %s4558_s21 = scalar_lea.sflag [#allocation8], %s279_s10 }
  0x16   : > { %s290_s20 = sshll.u32 %s283_s19, 4  ;;  %p4213_p7 = pneg %p4551_p6  ;;  %s291_s20 = int_to_ptr.vmem [resolvable:$true] %s290_s20 }
  0x17   : > { %s4224_s22 = scalar_lea.vmem %s291_s20, 256  ;;  %s4437_s23 = smov [#allocation7]  }
  0x18   : > { %p4225_p8 = scmp.ne.s32.totalorder %s291_s20, %s4224_s22  ;;  %s4229_s8 = sshll.u32 %s4437_s23, 4  ;;  %s4230_s8 = int_to_ptr.vmem [resolvable:$false] %s4229_s8 }
  0x19   : > { %s4231_s9 = scalar_lea.vmem %s4230_s8, 512  ;;  %p4232_p11 = scmp.lt.s32.totalorder %s291_s20, %s4230_s8 }
  0x1a   : > { %s289_s17 = scalar_lea.hbm %s5437_s1, %s4540_s12  ;;  %p4227_p9 = pnand %p4225_p8, %p4213_p7 }
  0x1b   : > { %p4233_p12 = scmp.lt.s32.totalorder %s4231_s9, %s4224_s22 }
  0x1c   : > { %p4228_p10 = pneg %p4227_p9 }
  0x1d   : > { %p4234_p13 = por %p4233_p12, %p4232_p11 }
  0x1f   : > { %p4235_p0 = pnand %p4234_p13, %p4228_p10 }
  0x21   : > { %4238 = shalt.err (!%p4235_p0)
}
  0x22   : > { %s5429_s11 = smov 64   ;;  %s5431_s15 = smov 4  }
  0x23   : > { %4024 = dma.hbm_to_vmem [thread:$0]  (!%p4551_p6), %s289_s17, 256, %s291_s20, %s4558_s21, %s5429_s11, %s5429_s11, %s5431_s15  }
  0x24   : > { %s331_s22 = scalar_lea.hbm %s5422_s3, %s4540_s12  ;;  %s325_s23 = scalar_lea.vmem [#allocation10], %s4545_s14 }
  0x25   : > { %s332_s8 = sshll.u32 %s325_s23, 4  ;;  %s4578_s9 = scalar_lea.sflag [#allocation11], %s279_s10  ;;  %s333_s8 = int_to_ptr.vmem [resolvable:$true] %s332_s8 }
  0x26   : > { %s4252_s1 = scalar_lea.vmem %s333_s8, 256  ;;  %s4440_s30 = smov [#allocation10]  }
  0x27   : > { %p4253_p1 = scmp.ne.s32.totalorder %s333_s8, %s4252_s1  ;;  %s4257_s28 = sshll.u32 %s4440_s30, 4  ;;  %s4258_s28 = int_to_ptr.vmem [resolvable:$false] %s4257_s28 }
  0x28   : > { %s4259_s17 = scalar_lea.vmem %s4258_s28, 512  ;;  %p4260_p4 = scmp.lt.s32.totalorder %s333_s8, %s4258_s28 }
  0x29   : > { %p4255_p2 = pnand %p4253_p1, %p4213_p7  ;;  %p4261_p5 = scmp.lt.s32.totalorder %s4259_s17, %s4252_s1 }
  0x2b   : > { %p4256_p3 = pneg %p4255_p2  ;;  %p4262_p8 = por %p4261_p5, %p4260_p4 }
  0x2d   : > { %p4263_p9 = pnand %p4262_p8, %p4256_p3 }
  0x2f   : > { %4266 = shalt.err (!%p4263_p9)
}
  0x30   : > { %4030 = dma.hbm_to_vmem [thread:$0]  (!%p4551_p6), %s331_s22, 256, %s333_s8, %s4578_s9, %s5429_s11, %s5429_s11, %s5431_s15  }
  0x31   : > { %s4590_s30 = sadd.s32 4294967295, %s4435_s29   ;;  %p83_p10 = scmp.ne.s32.totalorder %s4419_s25, %s4415_s24 }
  0x32   : > { %p84_p11 = scmp.eq.s32.totalorder %s4590_s30, 0  ;;  %p3496_p12 = scmp.ge.s32.totalorder %s4435_s29, 1 }
  0x33   : > { %p250_p13 = scmp.lt.s32.totalorder %s4435_s29, 3  ;;  %s4441_s10 = smov [#allocation4]  }
  0x34   : > { %p4599_p0 = por %p84_p11, %p83_p10  ;;  %s265_s20 = sshll.u32 %s4441_s10, 4  ;;  %s266_s20 = int_to_ptr.vmem [resolvable:$true] %s265_s20 }
  0x35   : > { %p4603_p1 = pnand %p3496_p12, %p250_p13  ;;  %s304_s23 = scalar_lea.vmem [#allocation9], %s4545_s14 }
  0x36   : > { %s311_s8 = sshll.u32 %s304_s23, 4  ;;  %s4278_s15 = scalar_lea.vmem %s266_s20, 512  ;;  %s4620_s8 = int_to_ptr.vmem [resolvable:$true] %s311_s8 }
  0x37   : > { %p4017_p2 = pneg %p4603_p1  ;;  %p4279_p5 = scmp.ne.s32.totalorder %s266_s20, %s4278_s15 }
  0x38   : > { %p4286_p10 = scmp.lt.s32.totalorder %s266_s20, %s266_s20  ;;  %p4287_p12 = scmp.lt.s32.totalorder %s4278_s15, %s4278_s15 }
  0x39   : > { %p4615_p3 = pnand %p4017_p2, %p84_p11 }
  0x3a   : > { %p4288_p13 = por %p4287_p12, %p4286_p10 }
  0x3b   : > { %p4269_p4 = pneg %p4615_p3 }
  0x3d   : > { %p4281_p8 = pnand %p4279_p5, %p4269_p4 }
  0x3f   : > { %p4282_p9 = pneg %p4281_p8 }
  0x41   : > { %p4289_p2 = pnand %p4288_p13, %p4282_p9 }
  0x43   : > { %4292 = shalt.err (!%p4289_p2)
}
  0x44   : > { %s4442_s16 = smov 128   ;;  %s4443_s24 = smov 8  }
  0x45   : > { %s5442_s0 = sld [smem:[#allocation20_spill]]  ;;  %s4306_s17 = scalar_lea.vmem %s4620_s8, 256 }
  0x46   : > { %p4307_p4 = scmp.ne.s32.totalorder %s4620_s8, %s4306_s17  ;;  %s4444_s15 = smov [#allocation9]  }
  0x47   : > { %s4311_s10 = sshll.u32 %s4444_s15, 4  ;;  %s4312_s10 = int_to_ptr.vmem [resolvable:$false] %s4311_s10 }
  0x48   : > { %p4309_p5 = pnand %p4307_p4, %p4213_p7  ;;  %s4313_s19 = scalar_lea.vmem %s4312_s10, 512 }
  0x49   : > { %p4314_p9 = scmp.lt.s32.totalorder %s4620_s8, %s4312_s10  ;;  %p4315_p10 = scmp.lt.s32.totalorder %s4313_s19, %s4306_s17 }
  0x4a   : > { %p4310_p8 = pneg %p4309_p5 }
  0x4b   : > { %4020 = dma.hbm_to_vmem [thread:$0]  (!%p4615_p3), %s5442_s0, 512, %s266_s20, [#allocation5], %s4442_s16, %s4442_s16, %s4443_s24  }
  0x4c   : > { %p4316_p12 = por %p4315_p10, %p4314_p9 }
  0x4e   : > { %p4317_p13 = pnand %p4316_p12, %p4310_p8 }
  0x50   : > { %4320 = shalt.err (!%p4317_p13)
}
  0x51   : > { %s5443_s22 = smov 4   ;;  %s5444_s11 = smov 64  }
  0x52   : > { %s5445_s24 = scalar_lea.hbm %s5421_s2, %s4540_s12  ;;  %s346_s10 = scalar_lea.vmem [#allocation12], %s4545_s14 }
  0x53   : > { %4027 = dma.hbm_to_vmem [thread:$0]  (!%p4551_p6), %s5445_s24, 256, %s4620_s8, %s4558_s21, %s5444_s11, %s5444_s11, %s5443_s22  }
  0x54   : > { %s353_s19 = sshll.u32 %s346_s10, 4  ;;  %s4445_s17 = smov [#allocation12]   ;;  %s354_s19 = int_to_ptr.vmem [resolvable:$true] %s353_s19 }
  0x55   : > { %s4334_s23 = scalar_lea.vmem %s354_s19, 256  ;;  %s4339_s15 = sshll.u32 %s4445_s17, 4  ;;  %s4340_s15 = int_to_ptr.vmem [resolvable:$false] %s4339_s15 }
  0x56   : > { %p4335_p3 = scmp.ne.s32.totalorder %s354_s19, %s4334_s23  ;;  %s4341_s0 = scalar_lea.vmem %s4340_s15, 512 }
  0x57   : > { %p4342_p5 = scmp.lt.s32.totalorder %s354_s19, %s4340_s15  ;;  %p4343_p8 = scmp.lt.s32.totalorder %s4341_s0, %s4334_s23 }
  0x58   : > { %p4337_p2 = pnand %p4335_p3, %p4213_p7 }
  0x59   : > { %p4344_p9 = por %p4343_p8, %p4342_p5 }
  0x5a   : > { %p4338_p4 = pneg %p4337_p2 }
  0x5c   : > { %p4345_p10 = pnand %p4344_p9, %p4338_p4 }
  0x5e   : > { %4348 = shalt.err (!%p4345_p10)
}
  0x5f   : > { %s5446_s8 = scalar_lea.hbm %s5423_s4, %s4540_s12  ;;  %379 = sbr.rel (%p4603_p1) target bundleno = 2449 (0x991), region = 48 }
  0x60   : > { %4033 = dma.hbm_to_vmem [thread:$0]  (!%p4551_p6), %s5446_s8, 256, %s354_s19, %s4578_s9, %s5444_s11, %s5444_s11, %s5443_s22  }
  0x64   : > { %4398 = dma.done.wait (%p84_p11), [#allocation5], 512  }
  0x65   : > { %4400 = vsyncadd (%p84_p11), [#allocation5], 4294966784  ;;  %s385_s0 = sand.u32 1, %s4590_s30   ;;  %s387_s18 = sand.u32 1, %s4419_s25  }
  0x66   : > { %s4674_s20 = sshll.u32 %s387_s18, 4  ;;  %s386_s16 = scalar_lea.sflag [#allocation8], %s385_s0 }
  0x67   : > { %s389_s12 = scalar_lea.vmem [#allocation7], %s4674_s20 }
  0x68   : > { %4402 = dma.done.wait (%p4599_p0), %s386_s16, 512  }
  0x69   : > { %4404 = vsyncadd (%p4599_p0), %s386_s16, 4294966784  ;;  %s398_s9 = scalar_lea.vmem [#allocation9], %s4674_s20  ;;  %s404_s28 = scalar_lea.sflag [#allocation11], %s385_s0 }
  0x6a   : > { %s407_s22 = scalar_lea.vmem [#allocation10], %s4674_s20 }
  0x6b   : > { %4406 = dma.done.wait (%p4599_p0), %s404_s28, 512  }
  0x6c   : > { %4408 = vsyncadd (%p4599_p0), %s404_s28, 4294966784  ;;  %p465_p6 = scmp.lt.s32.totalorder %s4427_s27, 1  ;;  %s416_s21 = scalar_lea.vmem [#allocation12], %s4674_s20 }
  0x6d   : > { %p3519_p7 = scmp.ne.s32.totalorder %s4427_s27, 0 }
  0x6e   : > { %s466_s11 = scalar_select %p465_p6, %s4427_s27, 1 }
  0x6f   : > { %477 = sbr.rel (%p3519_p7) target bundleno = 119 (0x77), region = 72 }
  0x70   : > { %s3517_s24 = sshll.u32 %s466_s11, 1 }
  0x71   : > { %s4692_s23 = scalar_lea.vmem %s5424_s5, %s3517_s24  ;;  %s4697_s14 = scalar_lea.vmem %s5425_s6, %s3517_s24 }
  0x74   : > { %v478_v0 = vld [vmem:[#allocation4] sm:$0xff]  ;;  %vm482_vm0 = vcmask 261120   ;;  %v479_v1 = vld [vmem:[#allocation4 + $0x8] sm:$0xff]  ;;  %v480_v2 = vld [vmem:[#allocation4 + $0x10] sm:$0xff] }
  0x75   : > { %483 = vst.msk [vmem:[#allocation2] sm:$0xff] %vm482_vm0, %v478_v0  ;;  %484 = vst.msk [vmem:[#allocation2 + $0x8] sm:$0xff] %vm482_vm0, %v479_v1  ;;  %v481_v3 = vld [vmem:[#allocation4 + $0x18] sm:$0xff] }
  0x76   : > { %485 = vst.msk [vmem:[#allocation2 + $0x10] sm:$0xff] %vm482_vm0, %v480_v2  ;;  %486 = vst.msk [vmem:[#allocation2 + $0x18] sm:$0xff] %vm482_vm0, %v481_v3 }
  0x77 PF: > { %v4103_v4 = vld [vmem:[%s389_s12 + $0x8] sm:$0xff]   ;;  %v4105_v6 = vld [vmem:[%s389_s12] sm:$0xff]   ;;  %vm509_vm1 = vcmask 261120   ;;  %vm703_vm2 = vcmask 64512   ;;  %v4446_v18 = vmov 0.0   ;;  %vm4447_vm3 = vmmov 0  }
  0x78   : > { %v4104_v5 = vld [vmem:[%s398_s9 + $0x8] sm:$0xff]   ;;  %3721 = vmatprep.subr.bf16.mxu0 %v4103_v4  ;;  %v4106_v7 = vld [vmem:[%s398_s9] sm:$0xff]   ;;  %vm1070_vm4 = vcmask 1043456   ;;  %vm976_vm5 = vcmask 31744   ;;  %s4449_s1 = smov 120   ;;  %vm1258_vm6 = vcmask 1041408  }
  0x79   : > { %3729 = vmatprep.subr.bf16.mxu1 %v4104_v5  ;;  %3722 = vmatpush3.bf16.msra.mxu0 %v4103_v4  ;;  %v4107_v14 = vld [vmem:[%s407_s22 + $0x8] sm:$0xff]   ;;  %v4108_v15 = vld [vmem:[%s407_s22] sm:$0xff]   ;;  %s4450_s8 = smov 112   ;;  %s4451_s0 = smov 104   ;;  %vm1961_vm7 = vcmask 130112   ;;  %vm2592_vm8 = vcmask 195712  }
  0x7a   : > { %3730 = vmatpush3.bf16.msra.mxu1 %v4104_v5  ;;  %3723 = vmatprep.subr.bf16.mxu0 %v4105_v6  ;;  %v4712_v16 = vld [vmem:[%s4692_s23] sm:$0x3]  ;;  %s4452_s18 = smov 8   ;;  %s4453_s16 = smov 16   ;;  %vm3223_vm9 = vcmask 261312  }
  0x7b   : > { %3731 = vmatprep.subr.bf16.mxu1 %v4106_v7  ;;  %v711_v17 = vsel %vm703_vm2, %v4712_v16, 0  ;;  %s4454_s12 = smov 24   ;;  %p3596_p11 = scmp.ne.s32.totalorder %s4427_s27, 1 }
  0x7c   : > { %v487_v8 = vld [vmem:[#allocation2] sm:$0xff]  ;;  %v488_v9 = vld [vmem:[#allocation2 + $0x8] sm:$0xff] }
  0x7d   : > { %v489_v10 = vld [vmem:[#allocation2 + $0x10] sm:$0xff]  ;;  %v491_v11 = vpack.c.bf16 %v488_v9, %v487_v8  ;;  %v490_v12 = vld [vmem:[#allocation2 + $0x18] sm:$0xff]  ;;  %3724 = vmatpush3.bf16.msra.mxu0 %v4105_v6 }
  0x7e   : > { %v492_v13 = vpack.c.bf16 %v490_v12, %v489_v10  ;;  %3732 = vmatpush3.bf16.msra.mxu1 %v4106_v7  ;;  %3737 = vmatprep.subr.bf16.mxu0 %v4107_v14  ;;  %v4448_v12 = vmov 1983009808  }
  0x7f   : > { %3725 = vmatprep.mubr.msk.bf16.mxu0 %vm509_vm1, %v491_v11  ;;  %3733 = vmatprep.mubr.msk.bf16.mxu1 %vm509_vm1, %v491_v11 }
  0x80   : > { %3726 = vmatmul.mubr.msk.bf16.vlgmr.msra.gmra.mxu0 %vm509_vm1, %v492_v13  ;;  %3993 = vmatprep.subr.msk.bf16.mxu1 %vm703_vm2, %v4712_v16 }
  0x81   : > { %3734 = vmatmul.mubr.msk.bf16.vlgmr.msra.gmra.mxu1 %vm509_vm1, %v492_v13  ;;  %3738 = vmatpush3.bf16.msra.mxu0 %v4107_v14  ;;  %v1327_v14 = vlaneseq }
  0x82   : > { %3739 = vmatprep.subr.bf16.mxu0 %v4108_v15  ;;  %3741 = vmatprep.mubr.msk.bf16.mxu0 %vm509_vm1, %v491_v11 }
  0x83   : > { %3746 = vmatpush3.bf16.xpose.msra.mxu1 %v711_v17  ;;  %v1328_v17 = vshrl.u32 %v1327_v14, 7 }
  0x84   : > { %3757 = vmatprep.subr.bf16.mxu1 %v4446_v18 }
  0x85   : > { %3740 = vmatpush3.bf16.msra.mxu0 %v4108_v15 }
  0x86   : > { %3751 = vmatprep.subr.bf16.mxu0 %v4446_v18 }
  0x88   : > { %3742 = vmatmul.mubr.msk.bf16.vlgmr.msra.gmra.mxu0 %vm509_vm1, %v492_v13  ;;  %v1325_v13 = vunpack.c.l.s4 %v4448_v12 }
  0x89   : > { %3753 = vmatprep.mubr.msk.bf16.mxu0 %vm4447_vm3, %v4446_v18 }
  0x8a   : > { %v1326_v15 = vunpack.c.0.s8 %v1325_v13 }
 0x140   : > { %v3727_v19 = vpop.f32.mrf.mxu0 }
 0x141   : > { %v3735_v20 = vpop.f32.mrf.mxu1  ;;  %v4763_v39 = vpack.c.bf16 %v3727_v19, %v3727_v19 }
 0x142   : > { %v550_v21 = vpop.f32.mrf.mxu0  ;;  %v4735_v32 = vpack.c.bf16 %v3735_v20, %v3735_v20 }
 0x143   : > { %v615_v22 = vpop.f32.mrf.mxu1  ;;  %v4743_v34 = vpack.c.bf16 %v550_v21, %v550_v21 }
 0x144   : > { %v4722_v23 = vpack.c.bf16 %v615_v22, %v615_v22  ;;  %v3728_v24 = vpop.f32.mrf.mxu0  ;;  %v888_v36 = vsel %vm703_vm2, %v4735_v32, 0 }
 0x145   : > { %v3736_v25 = vpop.f32.mrf.mxu1  ;;  %v4728_v30 = vpack.c.bf16 %v3728_v24, %v3727_v19  ;;  %v4770_v40 = vpack.c.bf16 %v3728_v24, %v3728_v24  ;;  %v4811_v19 = vsub.s32 %v1326_v15, %v1328_v17 }
 0x146   : > { %v553_v26 = vpop.f32.mrf.mxu0  ;;  %v796_v27 = vsel %vm703_vm2, %v4722_v23, 0  ;;  %v4746_v35 = vpack.c.bf16 %v3736_v25, %v3736_v25 }
 0x147   : > { %v4726_v28 = vpack.c.bf16 %v553_v26, %v550_v21  ;;  %v618_v29 = vpop.f32.mrf.mxu1  ;;  %3752 = vmatpush3.bf16.xpose.msra.mxu0 %v796_v27  ;;  %v4754_v37 = vpack.c.bf16 %v553_v26, %v553_v26  ;;  %v4817_v20 = vrot.slane %v4712_v16, %v4811_v19 }
 0x148   : > { %v4730_v31 = vpack.c.bf16 %v618_v29, %v618_v29  ;;  %3763 = vmatprep.subr.bf16.mxu0 %v4446_v18  ;;  %v934_v38 = vsel %vm703_vm2, %v4746_v35, 0  ;;  %v4776_v41 = vpop.f32.mrf.mxu0 }
 0x149   : > { %3747 = vmatprep.mubr.msk.bf16.mxu1 %vm703_vm2, %v4726_v28 }
 0x14a   : > { %3748 = vmatmul.mubr.msk.bf16.vlgmr.msra.gmra.mxu1 %vm703_vm2, %v4728_v30  ;;  %v842_v33 = vsel %vm703_vm2, %v4730_v31, 0  ;;  %v680_v42 = vpop.f32.mrf.mxu0 }
 0x14b   : > { %3758 = vmatpush3.bf16.xpose.msra.mxu1 %v842_v33  ;;  %3759 = vmatprep.mubr.msk.bf16.mxu1 %vm4447_vm3, %v4446_v18  ;;  %v4780_v45 = vpack.c.bf16 %v680_v42, %v680_v42 }
 0x14c   : > { %3769 = vmatprep.subr.bf16.mxu1 %v4446_v18  ;;  %v4778_v43 = vpop.f32.mrf.mxu0 }
 0x14d   : > { %v1072_v47 = vsel %vm1070_vm4, %v4780_v45, 0 }
 0x14e   : > { %3754 = vmatmul.mubr.msk.bf16.vlgmr.msra.gmra.mxu0 %vm703_vm2, %v4743_v34  ;;  %v683_v44 = vpop.f32.mrf.mxu0 }
 0x14f   : > { %3764 = vmatpush3.bf16.xpose.msra.mxu0 %v888_v36  ;;  %3765 = vmatprep.mubr.msk.bf16.mxu0 %vm4447_vm3, %v4446_v18  ;;  %v4782_v46 = vpack.c.bf16 %v683_v44, %v683_v44 }
 0x150   : > { %3775 = vmatprep.subr.bf16.mxu0 %v4446_v18 }
 0x151   : > { %v1118_v48 = vsel %vm1070_vm4, %v4782_v46, 0 }
 0x152   : > { %3760 = vmatmul.mubr.msk.bf16.vlgmr.msra.gmra.mxu1 %vm703_vm2, %v4754_v37 }
 0x153   : > { %3770 = vmatpush3.bf16.xpose.msra.mxu1 %v934_v38  ;;  %3771 = vmatprep.mubr.msk.bf16.mxu1 %vm4447_vm3, %v4446_v18 }
 0x154   : > { %3781 = vmatprep.subr.bf16.mxu1 %v4446_v18 }
 0x156   : > { %3766 = vmatmul.mubr.msk.bf16.vlgmr.msra.gmra.mxu0 %vm703_vm2, %v4763_v39 }
 0x157   : > { %3777 = vmatprep.mubr.msk.bf16.mxu0 %vm4447_vm3, %v4446_v18  ;;  %3776 = vmatpush3.bf16.msra.mxu0 %v1072_v47 }
 0x158   : > { %3787 = vmatprep.subr.bf16.mxu0 %v4446_v18 }
 0x15a   : > { %3772 = vmatmul.mubr.msk.bf16.vlgmr.msra.gmra.mxu1 %vm703_vm2, %v4770_v40 }
 0x15b   : > { %3783 = vmatprep.mubr.msk.bf16.mxu1 %vm4447_vm3, %v4446_v18  ;;  %3782 = vmatpush3.bf16.msra.mxu1 %v1118_v48 }
 0x15c   : > { %3793 = vmatprep.subr.bf16.mxu1 %v4446_v18 }
 0x20a   : > { %v4790_v49 = vpop.f32.mrf.mxu1 }
 0x20b   : > { %v983_v63 = vsel %vm976_vm5, %v4790_v49, -inf }
 0x20c   : > { %v4792_v50 = vpop.f32.mrf.mxu1 }
 0x20d   : > { %v977_v51 = vsel %vm976_vm5, %v4792_v50, -inf }
 0x20e   : > { %v832_v52 = vpop.f32.mrf.mxu0  ;;  %978 = vmax.xlane.f32.xlu0 %v977_v51  ;;  %v4796_v53 = vpop.f32.mrf.mxu1 }
 0x20f   : > { %v989_v57 = vsel %vm703_vm2, %v832_v52, -inf  ;;  %v986_v4 = vsel %vm976_vm5, %v4796_v53, -inf }
 0x210   : > { %v3755_v54 = vpop.f32.mrf.mxu0  ;;  %v4798_v55 = vpop.f32.mrf.mxu1 }
 0x211   : > { %v980_v56 = vsel %vm976_vm5, %v4798_v55, -inf }
 0x212   : > { %v835_v58 = vpop.f32.mrf.mxu0  ;;  %981 = vmax.xlane.f32.xlu1 %v980_v56  ;;  %v878_v59 = vpop.f32.mrf.mxu1  ;;  %990 = vmax.xlane.f32.xlu0 %v989_v57 }
 0x213   : > { %v992_v62 = vsel %vm703_vm2, %v878_v59, -inf }
 0x214   : > { %v3756_v60 = vpop.f32.mrf.mxu0  ;;  %v3761_v61 = vpop.f32.mrf.mxu1 }
 0x215   : > { %v4854_v60 = vld [vmem:[%s4697_s14] sm:$0x3]  ;;  %v4858_v61 = vpack.c.bf16 %v4778_v43, %v4778_v43 }
 0x216   : > { %v924_v0 = vpop.f32.mrf.mxu0  ;;  %993 = vmax.xlane.f32.xlu1 %v992_v62  ;;  %v881_v1 = vpop.f32.mrf.mxu1  ;;  %984 = vmax.xlane.f32.xlu0 %v983_v63 }
 0x217   : > { %v995_v5 = vsel %vm703_vm2, %v924_v0, -inf  ;;  %v1210_v43 = vsel %vm1070_vm4, %v4858_v61, 0 }
 0x218   : > { %v3767_v2 = vpop.f32.mrf.mxu0  ;;  %v3762_v3 = vpop.f32.mrf.mxu1 }
 0x21a   : > { %v927_v6 = vpop.f32.mrf.mxu0  ;;  %v4809_v7 = vpop.f32.mrf.mxu1  ;;  %987 = vmax.xlane.f32.xlu0 %v986_v4  ;;  %996 = vmax.xlane.f32.xlu1 %v995_v5  ;;  %v1260_v5 = vsel %vm1258_vm6, %v4854_v60, 0 }
 0x21b   : > { %v998_v21 = vsel %vm703_vm2, %v4809_v7, -inf }
 0x21c   : > { %v3768_v8 = vpop.f32.mrf.mxu0  ;;  %v3773_v9 = vpop.f32.mrf.mxu1 }
 0x21e   : > { %v973_v10 = vpop.f32.mrf.mxu1 }
 0x220   : > { %v3774_v11 = vpop.f32.mrf.mxu1 }
 0x22b   : > { %1393 = vrot.lane.b32.xlu1 %v4722_v23, %s4449_s1 }
 0x230   : > { %1331 = vrot.lane.b32.xlu0 %v4817_v20, %s4449_s1 }
 0x234   : > { %1443 = vrot.lane.b32.xlu0 %v4730_v31, %s4449_s1 }
 0x238   : > { %1493 = vrot.lane.b32.xlu0 %v4735_v32, %s4449_s1 }
 0x23c   : > { %1543 = vrot.lane.b32.xlu0 %v4746_v35, %s4449_s1 }
 0x240   : > { %1541 = vrot.lane.b32.xlu0 %v4770_v40, %s4449_s1 }
 0x24f   : > { %999 = vmax.xlane.f32.xlu1 %v998_v21 }
 0x260   : > { %1319 = vrot.lane.b32.xlu1 %v4726_v28, %s4449_s1 }
 0x264   : > { %1321 = vrot.lane.b32.xlu1 %v4728_v30, %s4449_s1 }
 0x268   : > { %1391 = vrot.lane.b32.xlu1 %v4743_v34, %s4449_s1 }
 0x26c   : > { %1441 = vrot.lane.b32.xlu1 %v4754_v37, %s4449_s1 }
 0x270   : > { %1491 = vrot.lane.b32.xlu1 %v4763_v39, %s4449_s1 }
 0x274   : > { %1681 = vrot.lane.b32.xlu1 %v4780_v45, %s4449_s1 }
 0x297   : > { %v979_v16 = vpop.xlane.xlu0 %978 }
 0x29b   : > { %v982_v22 = vpop.xlane.xlu1 %981  ;;  %v991_v24 = vpop.xlane.xlu0 %990 }
 0x29c   : > { %v1001_v25 = vmax.f32 %v979_v16, %v991_v24 }
 0x29e   : > { %v1017_v26 = vsub.f32 %v832_v52, %v1001_v25  ;;  %v1005_v47 = vsub.f32 %v4792_v50, %v1001_v25  ;;  %v4847_v52 = vpack.c.bf16 %v4776_v41, %v4776_v41 }
 0x29f   : > { %v994_v27 = vpop.xlane.xlu1 %993  ;;  %v985_v42 = vpop.xlane.xlu0 %984 }
 0x2a0   : > { %v1021_v29 = vmul.f32 1.442695, %v1017_v26  ;;  %v1002_v33 = vmax.f32 %v982_v22, %v994_v27  ;;  %v1009_v57 = vmul.f32 1.442695, %v1005_v47  ;;  %v1164_v62 = vsel %vm1070_vm4, %v4847_v52, 0 }
 0x2a2   : > { %v1006_v36 = vsub.f32 %v4798_v55, %v1002_v33  ;;  %v1018_v38 = vsub.f32 %v878_v59, %v1002_v33  ;;  %4111 = vpow2.f32 %v1021_v29 }
 0x2a3   : > { %v997_v44 = vpop.xlane.xlu1 %996  ;;  %v988_v50 = vpop.xlane.xlu0 %987 }
 0x2a4   : > { %v1023_v48 = vmul.f32 1.442695, %v1018_v38  ;;  %v1003_v51 = vmax.f32 %v985_v42, %v997_v44  ;;  %v1011_v54 = vmul.f32 1.442695, %v1006_v36 }
 0x2a6   : > { %v1019_v56 = vsub.f32 %v924_v0, %v1003_v51  ;;  %4113 = vpow2.f32 %v1023_v48  ;;  %v1007_v9 = vsub.f32 %v4790_v49, %v1003_v51 }
 0x2a7   : > { %4115 = vpow2.f32 %v1011_v54  ;;  %v1332_v2 = vpop.permute.xlu0 %1331  ;;  %v1394_v8 = vpop.permute.xlu1 %1393 }
 0x2a8   : > { %v1025_v58 = vmul.f32 1.442695, %v1019_v56  ;;  %v1013_v12 = vmul.f32 1.442695, %v1007_v9  ;;  %v1340_v27 = vsel %vm703_vm2, %v1332_v2, 0  ;;  %v1399_v29 = vsel %vm703_vm2, %v1394_v8, 0 }
 0x2aa   : > { %4117 = vpow2.f32 %v1025_v58 }
 0x2ab   : > { %4119 = vpow2.f32 %v1009_v57 }
 0x2ac   : > { %4121 = vpow2.f32 %v1013_v12 }
 0x2af   : > { %v4849_v55 = vpop.eup %4111 }
 0x2b0   : > { %v1063_v59 = vpack.c.bf16 %v4849_v55, %v4849_v55 }
 0x2b2   : > { %3778 = vmatmul.mubr.msk.bf16.vlgmr.msra.gmra.mxu0 %vm703_vm2, %v1063_v59 }
 0x2b3   : > { %v4863_v41 = vpop.eup %4113  ;;  %3788 = vmatpush3.bf16.msra.mxu0 %v1164_v62  ;;  %3789 = vmatprep.mubr.msk.bf16.mxu0 %vm4447_vm3, %v4446_v18 }
 0x2b4   : > { %v1064_v63 = vpack.c.bf16 %v4863_v41, %v4863_v41  ;;  %3994 = vmatprep.subr.msk.bf16.mxu0 %vm1258_vm6, %v4854_v60  ;;  %v4871_v0 = vpop.eup %4115 }
 0x2b6   : > { %3784 = vmatmul.mubr.msk.bf16.vlgmr.msra.gmra.mxu1 %vm703_vm2, %v1064_v63 }
 0x2b7   : > { %v4876_v1 = vpop.eup %4117  ;;  %3794 = vmatpush3.bf16.msra.mxu1 %v1210_v43  ;;  %3795 = vmatprep.mubr.msk.bf16.mxu1 %vm4447_vm3, %v4446_v18 }
 0x2b8   : > { %v4880_v3 = vpop.eup %4119  ;;  %v1065_v4 = vpack.c.bf16 %v4876_v1, %v4876_v1  ;;  %3995 = vmatprep.subr.msk.bf16.mxu1 %vm703_vm2, %v1332_v2 }
 0x2b9   : > { %v1061_v6 = vpack.c.bf16 %v4871_v0, %v4880_v3  ;;  %v4895_v24 = vpop.eup %4121 }
 0x2ba   : > { %3790 = vmatmul.mubr.msk.bf16.vlgmr.msra.gmra.mxu0 %vm703_vm2, %v1065_v4 }
 0x2bb   : > { %3801 = vmatprep.mubr.msk.bf16.mxu0 %vm976_vm5, %v1061_v6  ;;  %3800 = vmatpush3.bf16.msra.mxu0 %v1260_v5 }
 0x2bc   : > { %3811 = vmatprep.subr.bf16.mxu0 %v4446_v18 }
 0x2d8   : > { %v1000_v10 = vpop.xlane.xlu1 %999 }
 0x2d9   : > { %v1004_v11 = vmax.f32 %v988_v50, %v1000_v10 }
 0x2db   : > { %v1008_v13 = vsub.f32 %v4796_v53, %v1004_v11  ;;  %v1020_v14 = vsub.f32 %v4809_v7, %v1004_v11  ;;  %v1444_v53 = vpop.permute.xlu0 %1443 }
 0x2dc   : > { %v1320_v21 = vpop.permute.xlu1 %1319  ;;  %v1449_v44 = vsel %vm703_vm2, %v1444_v53, 0 }
 0x2dd   : > { %v1015_v15 = vmul.f32 1.442695, %v1008_v13  ;;  %v1027_v17 = vmul.f32 1.442695, %v1020_v14 }
 0x2df   : > { %4123 = vpow2.f32 %v1015_v15  ;;  %v1494_v36 = vpop.permute.xlu0 %1493 }
 0x2e0   : > { %4125 = vpow2.f32 %v1027_v17  ;;  %v1322_v16 = vpop.permute.xlu1 %1321  ;;  %v1499_v42 = vsel %vm703_vm2, %v1494_v36, 0 }
 0x2e3   : > { %v1544_v48 = vpop.permute.xlu0 %1543 }
 0x2e4   : > { %v1392_v22 = vpop.permute.xlu1 %1391  ;;  %v1549_v54 = vsel %vm703_vm2, %v1544_v48, 0 }
 0x2e7   : > { %v1542_v56 = vpop.permute.xlu0 %1541 }
 0x2e8   : > { %v1442_v33 = vpop.permute.xlu1 %1441 }
 0x2ec   : > { %v4897_v25 = vpop.eup %4123  ;;  %v1492_v38 = vpop.permute.xlu1 %1491 }
 0x2ed   : > { %v4899_v49 = vpop.eup %4125  ;;  %v1062_v26 = vpack.c.bf16 %v4897_v25, %v4895_v24 }
 0x2ee   : > { %v1066_v7 = vpack.c.bf16 %v4899_v49, %v4899_v49 }
 0x2ef   : > { %3802 = vmatmul.mubr.msk.bf16.vlgmr.msra.gmra.mxu0 %vm976_vm5, %v1062_v26 }
 0x2f0   : > { %3796 = vmatmul.mubr.msk.bf16.vlgmr.msra.gmra.mxu1 %vm703_vm2, %v1066_v7  ;;  %3812 = vmatpush3.bf16.xpose.msra.mxu0 %v1399_v29  ;;  %v1682_v47 = vpop.permute.xlu1 %1681 }
 0x2f1   : > { %3806 = vmatpush3.bf16.xpose.msra.mxu1 %v1340_v27  ;;  %3807 = vmatprep.mubr.msk.bf16.mxu1 %vm703_vm2, %v1320_v21  ;;  %v1687_v51 = vsel %vm1070_vm4, %v1682_v47, 0 }
 0x2f2   : > { %3813 = vmatprep.mubr.msk.bf16.mxu0 %vm4447_vm3, %v4446_v18  ;;  %3817 = vmatprep.subr.bf16.mxu1 %v4446_v18 }
 0x2f3   : > { %3823 = vmatprep.subr.bf16.mxu0 %v4446_v18 }
 0x2f7   : > { %3814 = vmatmul.mubr.msk.bf16.vlgmr.msra.gmra.mxu0 %vm703_vm2, %v1392_v22 }
 0x2f8   : > { %3808 = vmatmul.mubr.msk.bf16.vlgmr.msra.gmra.mxu1 %vm703_vm2, %v1322_v16  ;;  %3824 = vmatpush3.bf16.xpose.msra.mxu0 %v1499_v42 }
 0x2f9   : > { %3818 = vmatpush3.bf16.xpose.msra.mxu1 %v1449_v44  ;;  %3819 = vmatprep.mubr.msk.bf16.mxu1 %vm4447_vm3, %v4446_v18 }
 0x2fa   : > { %3825 = vmatprep.mubr.msk.bf16.mxu0 %vm4447_vm3, %v4446_v18  ;;  %3829 = vmatprep.subr.bf16.mxu1 %v4446_v18 }
 0x2fb   : > { %3835 = vmatprep.subr.bf16.mxu0 %v4446_v18 }
 0x2ff   : > { %3826 = vmatmul.mubr.msk.bf16.vlgmr.msra.gmra.mxu0 %vm703_vm2, %v1492_v38 }
 0x300   : > { %3820 = vmatmul.mubr.msk.bf16.vlgmr.msra.gmra.mxu1 %vm703_vm2, %v1442_v33  ;;  %3836 = vmatpush3.bf16.msra.mxu0 %v1687_v51 }
 0x301   : > { %3830 = vmatpush3.bf16.xpose.msra.mxu1 %v1549_v54  ;;  %3831 = vmatprep.mubr.msk.bf16.mxu1 %vm4447_vm3, %v4446_v18 }
 0x302   : > { %3841 = vmatprep.subr.bf16.mxu1 %v4446_v18  ;;  %3837 = vmatprep.mubr.msk.bf16.mxu0 %vm4447_vm3, %v4446_v18 }
 0x303   : > { %3847 = vmatprep.subr.bf16.mxu0 %v4446_v18 }
 0x308   : > { %3832 = vmatmul.mubr.msk.bf16.vlgmr.msra.gmra.mxu1 %vm703_vm2, %v1542_v56 }
 0x309   : > { %3843 = vmatprep.mubr.msk.bf16.mxu1 %vm4447_vm3, %v4446_v18 }
 0x372   : > { %v1108_v57 = vpop.f32.mrf.mxu0 }
 0x374   : > { %v3779_v58 = vpop.f32.mrf.mxu0 }
 0x376   : > { %v1111_v59 = vpop.f32.mrf.mxu0  ;;  %v1154_v50 = vpop.f32.mrf.mxu1 }
 0x378   : > { %v3780_v62 = vpop.f32.mrf.mxu0  ;;  %v3785_v63 = vpop.f32.mrf.mxu1 }
 0x37a   : > { %v1157_v43 = vpop.f32.mrf.mxu1  ;;  %v1200_v2 = vpop.f32.mrf.mxu0 }
 0x37c   : > { %v3786_v4 = vpop.f32.mrf.mxu1  ;;  %v3791_v5 = vpop.f32.mrf.mxu0 }
 0x37e   : > { %v1203_v6 = vpop.f32.mrf.mxu0 }
 0x380   : > { %v3792_v8 = vpop.f32.mrf.mxu0 }
 0x3af   : > { %v3803_v9 = vpop.f32.mrf.mxu0 }
 0x3b0   : > { %v1246_v10 = vpop.f32.mrf.mxu1  ;;  %v4937_v11 = vadd.f32 %v3803_v9, %v1200_v2 }
 0x3b1   : > { %v1296_v12 = vpop.f32.mrf.mxu0 }
 0x3b2   : > { %v3797_v13 = vpop.f32.mrf.mxu1  ;;  %v4939_v14 = vadd.f32 %v1296_v12, %v1108_v57  ;;  %v4971_v12 = vrot.slane %v4854_v60, %v4811_v19 }
 0x3b3   : > { %v3804_v15 = vpop.f32.mrf.mxu0 }
 0x3b4   : > { %v1249_v17 = vpop.f32.mrf.mxu1  ;;  %v4941_v21 = vadd.f32 %v3804_v15, %v1246_v10 }
 0x3b5   : > { %v1299_v16 = vpop.f32.mrf.mxu0 }
 0x3b6   : > { %v3798_v22 = vpop.f32.mrf.mxu1  ;;  %v4943_v26 = vadd.f32 %v1299_v16, %v1154_v50 }
 0x3b7   : > { %v1435_v53 = vpop.f32.mrf.mxu0 }
 0x3b8   : > { %v4945_v7 = vpop.f32.mrf.mxu1  ;;  %v1603_v27 = vsel %vm703_vm2, %v1435_v53, -inf }
 0x3b9   : > { %1604 = vmax.xlane.f32.xlu0 %v1603_v27  ;;  %v3815_v29 = vpop.f32.mrf.mxu0  ;;  %v1597_v33 = vsel %vm976_vm5, %v4945_v7, -inf }
 0x3ba   : > { %1598 = vmax.xlane.f32.xlu1 %v1597_v33  ;;  %v4950_v36 = vpop.f32.mrf.mxu1 }
 0x3bb   : > { %v1438_v38 = vpop.f32.mrf.mxu0  ;;  %v1591_v47 = vsel %vm976_vm5, %v4950_v36, -inf }
 0x3bc   : > { %v4952_v42 = vpop.f32.mrf.mxu1 }
 0x3bd   : > { %v3816_v44 = vpop.f32.mrf.mxu0  ;;  %v1600_v58 = vsel %vm976_vm5, %v4952_v42, -inf }
 0x3be   : > { %1592 = vmax.xlane.f32.xlu1 %v1591_v47  ;;  %v1379_v48 = vpop.f32.mrf.mxu1 }
 0x3bf   : > { %v4956_v51 = vpop.f32.mrf.mxu0  ;;  %v1594_v54 = vsel %vm976_vm5, %v1379_v48, -inf }
 0x3c0   : > { %1595 = vmax.xlane.f32.xlu0 %v1594_v54  ;;  %v1485_v56 = vpop.f32.mrf.mxu1  ;;  %v1609_v4 = vsel %vm703_vm2, %v4956_v51, -inf }
 0x3c1   : > { %v3827_v57 = vpop.f32.mrf.mxu0  ;;  %v1606_v62 = vsel %vm703_vm2, %v1485_v56, -inf }
 0x3c2   : > { %1601 = vmax.xlane.f32.xlu1 %v1600_v58  ;;  %v3821_v59 = vpop.f32.mrf.mxu1 }
 0x3c3   : > { %v1538_v50 = vpop.f32.mrf.mxu0 }
 0x3c4   : > { %1607 = vmax.xlane.f32.xlu0 %v1606_v62  ;;  %v1488_v63 = vpop.f32.mrf.mxu1 }
 0x3c5   : > { %v3828_v43 = vpop.f32.mrf.mxu0 }
 0x3c6   : > { %v3822_v2 = vpop.f32.mrf.mxu1 }
 0x3c8   : > { %1610 = vmax.xlane.f32.xlu0 %v1609_v4  ;;  %v1585_v5 = vpop.f32.mrf.mxu1 }
 0x3c9   : > { %v1612_v8 = vsel %vm703_vm2, %v1585_v5, -inf }
 0x3ca   : > { %v3833_v6 = vpop.f32.mrf.mxu1 }
 0x3cc   : > { %1613 = vmax.xlane.f32.xlu0 %v1612_v8  ;;  %v1588_v9 = vpop.f32.mrf.mxu1 }
 0x3ce   : > { %v3834_v10 = vpop.f32.mrf.mxu1 }
 0x3d3   : > { %1777 = vrot.lane.b32.xlu1 %v4847_v52, %s4449_s1 }
 0x3d7   : > { %1825 = vrot.lane.b32.xlu1 %v4858_v61, %s4449_s1 }
 0x3db   : > { %1881 = vrot.lane.b32.xlu1 %v4971_v12, %s4449_s1 }
 0x3df   : > { %2032 = vrot.lane.b32.xlu1 %v4722_v23, %s4450_s8 }
 0x3e2   : > { %1729 = vrot.lane.b32.xlu0 %v4782_v46, %s4449_s1 }
 0x3e3   : > { %1968 = vrot.lane.b32.xlu1 %v4728_v30, %s4450_s8 }
 0x3e6   : > { %1970 = vrot.lane.b32.xlu0 %v4817_v20, %s4450_s8 }
 0x3e7   : > { %2030 = vrot.lane.b32.xlu1 %v4743_v34, %s4450_s8 }
 0x3ea   : > { %1966 = vrot.lane.b32.xlu0 %v4726_v28, %s4450_s8 }
 0x3eb   : > { %2080 = vrot.lane.b32.xlu1 %v4754_v37, %s4450_s8 }
 0x3ee   : > { %2082 = vrot.lane.b32.xlu0 %v4730_v31, %s4450_s8 }
 0x3ef   : > { %2130 = vrot.lane.b32.xlu1 %v4763_v39, %s4450_s8 }
 0x3f2   : > { %2132 = vrot.lane.b32.xlu0 %v4735_v32, %s4450_s8 }
 0x3f3   : > { %2320 = vrot.lane.b32.xlu1 %v4780_v45, %s4450_s8 }
 0x3f6   : > { %2182 = vrot.lane.b32.xlu0 %v4746_v35, %s4450_s8 }
 0x3fa   : > { %2180 = vrot.lane.b32.xlu0 %v4770_v40, %s4450_s8 }
 0x442   : > { %v1605_v60 = vpop.xlane.xlu0 %1604 }
 0x443   : > { %v1599_v19 = vpop.xlane.xlu1 %1598 }
 0x447   : > { %v1593_v13 = vpop.xlane.xlu1 %1592 }
 0x448   : > { %v1615_v15 = vmax.f32 %v1593_v13, %v1605_v60 }
 0x449   : > { %v1596_v17 = vpop.xlane.xlu0 %1595 }
 0x44a   : > { %v1631_v16 = vsub.f32 %v1435_v53, %v1615_v15  ;;  %v1619_v57 = vsub.f32 %v4950_v36, %v1615_v15 }
 0x44b   : > { %v1602_v22 = vpop.xlane.xlu1 %1601 }
 0x44c   : > { %v1635_v27 = vmul.f32 1.442695, %v1631_v16  ;;  %v1623_v53 = vmul.f32 1.442695, %v1619_v57 }
 0x44d   : > { %v1608_v29 = vpop.xlane.xlu0 %1607 }
 0x44e   : > { %v1616_v33 = vmax.f32 %v1596_v17, %v1608_v29  ;;  %4127 = vpow2.f32 %v1635_v27 }
 0x44f   : > { %v1778_v38 = vpop.permute.xlu1 %1777 }
 0x450   : > { %v1620_v44 = vsub.f32 %v1379_v48, %v1616_v33  ;;  %v1632_v47 = vsub.f32 %v1485_v56, %v1616_v33 }
 0x451   : > { %v1611_v54 = vpop.xlane.xlu0 %1610 }
 0x452   : > { %v1637_v58 = vmul.f32 1.442695, %v1632_v47  ;;  %v1617_v59 = vmax.f32 %v1599_v19, %v1611_v54  ;;  %v1625_v50 = vmul.f32 1.442695, %v1620_v44 }
 0x453   : > { %v1826_v63 = vpop.permute.xlu1 %1825 }
 0x454   : > { %v1633_v62 = vsub.f32 %v4956_v51, %v1617_v59  ;;  %4129 = vpow2.f32 %v1637_v58  ;;  %v1621_v48 = vsub.f32 %v4945_v7, %v1617_v59  ;;  %v1783_v7 = vsel %vm1070_vm4, %v1778_v38, 0 }
 0x455   : > { %v1614_v43 = vpop.xlane.xlu0 %1613  ;;  %4131 = vpow2.f32 %v1625_v50 }
 0x456   : > { %v1639_v2 = vmul.f32 1.442695, %v1633_v62  ;;  %v1618_v4 = vmax.f32 %v1602_v22, %v1614_v43  ;;  %v1627_v60 = vmul.f32 1.442695, %v1621_v48  ;;  %v1831_v22 = vsel %vm1070_vm4, %v1826_v63, 0 }
 0x457   : > { %v1882_v9 = vpop.permute.xlu1 %1881 }
 0x458   : > { %v1622_v6 = vsub.f32 %v4952_v42, %v1618_v4  ;;  %v1634_v8 = vsub.f32 %v1585_v5, %v1618_v4  ;;  %4133 = vpow2.f32 %v1639_v2  ;;  %v1890_v38 = vsel %vm1258_vm6, %v1882_v9, 0 }
 0x459   : > { %v1730_v56 = vpop.permute.xlu0 %1729  ;;  %4135 = vpow2.f32 %v1623_v53 }
 0x45a   : > { %v1641_v36 = vmul.f32 1.442695, %v1634_v8  ;;  %v1735_v10 = vsel %vm1070_vm4, %v1730_v56, 0  ;;  %v1629_v51 = vmul.f32 1.442695, %v1622_v6 }
 0x45b   : > { %3842 = vmatpush3.bf16.msra.mxu1 %v1735_v10  ;;  %v5006_v19 = vpop.eup %4127  ;;  %v2033_v5 = vpop.permute.xlu1 %2032 }
 0x45c   : > { %3853 = vmatprep.subr.bf16.mxu1 %v4446_v18  ;;  %4137 = vpow2.f32 %v1641_v36  ;;  %v1677_v42 = vpack.c.bf16 %v5006_v19, %v5006_v19  ;;  %v2038_v2 = vsel %vm703_vm2, %v2033_v5, 0 }
 0x45d   : > { %4139 = vpow2.f32 %v1629_v51  ;;  %v1971_v15 = vpop.permute.xlu0 %1970 }
 0x45e   : > { %3838 = vmatmul.mubr.msk.bf16.vlgmr.msra.gmra.mxu0 %vm703_vm2, %v1677_v42  ;;  %4141 = vpow2.f32 %v1627_v60  ;;  %v1979_v58 = vsel %vm703_vm2, %v1971_v15, 0 }
 0x45f   : > { %3848 = vmatpush3.bf16.msra.mxu0 %v1783_v7  ;;  %3849 = vmatprep.mubr.msk.bf16.mxu0 %vm4447_vm3, %v4446_v18  ;;  %v1969_v29 = vpop.permute.xlu1 %1968 }
 0x460   : > { %3996 = vmatprep.subr.msk.bf16.mxu0 %vm1258_vm6, %v1882_v9 }
 0x461   : > { %v5016_v13 = vpop.eup %4129  ;;  %v1967_v47 = vpop.permute.xlu0 %1966 }
 0x462   : > { %v1678_v17 = vpack.c.bf16 %v5016_v13, %v5016_v13  ;;  %v5020_v16 = vpop.eup %4131 }
 0x463   : > { %v2031_v62 = vpop.permute.xlu1 %2030 }
 0x464   : > { %3844 = vmatmul.mubr.msk.bf16.vlgmr.msra.gmra.mxu1 %vm703_vm2, %v1678_v17 }
 0x465   : > { %v5024_v27 = vpop.eup %4133  ;;  %3854 = vmatpush3.bf16.msra.mxu1 %v1831_v22  ;;  %3855 = vmatprep.mubr.msk.bf16.mxu1 %vm4447_vm3, %v4446_v18  ;;  %v2083_v43 = vpop.permute.xlu0 %2082 }
 0x466   : > { %v5028_v33 = vpop.eup %4135  ;;  %v1679_v44 = vpack.c.bf16 %v5024_v27, %v5024_v27  ;;  %3997 = vmatprep.subr.msk.bf16.mxu1 %vm703_vm2, %v1971_v15  ;;  %v2088_v8 = vsel %vm703_vm2, %v2083_v43, 0 }
 0x467   : > { %v1675_v54 = vpack.c.bf16 %v5020_v16, %v5028_v33  ;;  %v2081_v4 = vpop.permute.xlu1 %2080 }
 0x468   : > { %3850 = vmatmul.mubr.msk.bf16.vlgmr.msra.gmra.mxu0 %vm703_vm2, %v1679_v44 }
 0x469   : > { %v5037_v57 = vpop.eup %4137  ;;  %3860 = vmatpush3.bf16.msra.mxu0 %v1890_v38  ;;  %3861 = vmatprep.mubr.msk.bf16.mxu0 %vm976_vm5, %v1675_v54  ;;  %v2133_v6 = vpop.permute.xlu0 %2132 }
 0x46a   : > { %v1680_v59 = vpack.c.bf16 %v5037_v57, %v5037_v57  ;;  %3871 = vmatprep.subr.bf16.mxu0 %v4446_v18  ;;  %v5044_v50 = vpop.eup %4139  ;;  %v2138_v56 = vsel %vm703_vm2, %v2133_v6, 0 }
 0x46b   : > { %v5047_v63 = vpop.eup %4141  ;;  %v2131_v48 = vpop.permute.xlu1 %2130 }
 0x46c   : > { %3856 = vmatmul.mubr.msk.bf16.vlgmr.msra.gmra.mxu1 %vm703_vm2, %v1680_v59  ;;  %v1676_v53 = vpack.c.bf16 %v5044_v50, %v5047_v63 }
 0x46d   : > { %3866 = vmatpush3.bf16.xpose.msra.mxu1 %v1979_v58  ;;  %3867 = vmatprep.mubr.msk.bf16.mxu1 %vm703_vm2, %v1967_v47  ;;  %v2183_v36 = vpop.permute.xlu0 %2182 }
 0x46e   : > { %3877 = vmatprep.subr.bf16.mxu1 %v4446_v18  ;;  %v2188_v9 = vsel %vm703_vm2, %v2183_v36, 0 }
 0x46f   : > { %v2321_v10 = vpop.permute.xlu1 %2320 }
 0x470   : > { %3862 = vmatmul.mubr.msk.bf16.vlgmr.msra.gmra.mxu0 %vm976_vm5, %v1676_v53  ;;  %v2326_v51 = vsel %vm1070_vm4, %v2321_v10, 0 }
 0x471   : > { %3872 = vmatpush3.bf16.xpose.msra.mxu0 %v2038_v2  ;;  %3873 = vmatprep.mubr.msk.bf16.mxu0 %vm4447_vm3, %v4446_v18  ;;  %v2181_v60 = vpop.permute.xlu0 %2180 }
 0x472   : > { %3883 = vmatprep.subr.bf16.mxu0 %v4446_v18 }
 0x474   : > { %3868 = vmatmul.mubr.msk.bf16.vlgmr.msra.gmra.mxu1 %vm703_vm2, %v1969_v29 }
 0x475   : > { %3878 = vmatpush3.bf16.xpose.msra.mxu1 %v2088_v8  ;;  %3879 = vmatprep.mubr.msk.bf16.mxu1 %vm4447_vm3, %v4446_v18 }
 0x476   : > { %3889 = vmatprep.subr.bf16.mxu1 %v4446_v18 }
 0x478   : > { %3874 = vmatmul.mubr.msk.bf16.vlgmr.msra.gmra.mxu0 %vm703_vm2, %v2031_v62 }
 0x479   : > { %3884 = vmatpush3.bf16.xpose.msra.mxu0 %v2138_v56  ;;  %3885 = vmatprep.mubr.msk.bf16.mxu0 %vm4447_vm3, %v4446_v18 }
 0x47a   : > { %3895 = vmatprep.subr.bf16.mxu0 %v4446_v18 }
 0x47c   : > { %3880 = vmatmul.mubr.msk.bf16.vlgmr.msra.gmra.mxu1 %vm703_vm2, %v2081_v4 }
 0x47d   : > { %3890 = vmatpush3.bf16.xpose.msra.mxu1 %v2188_v9  ;;  %3891 = vmatprep.mubr.msk.bf16.mxu1 %vm4447_vm3, %v4446_v18 }
 0x47e   : > { %3901 = vmatprep.subr.bf16.mxu1 %v4446_v18 }
 0x480   : > { %3886 = vmatmul.mubr.msk.bf16.vlgmr.msra.gmra.mxu0 %vm703_vm2, %v2131_v48 }
 0x481   : > { %3896 = vmatpush3.bf16.msra.mxu0 %v2326_v51  ;;  %3897 = vmatprep.mubr.msk.bf16.mxu0 %vm4447_vm3, %v4446_v18 }
 0x482   : > { %3907 = vmatprep.subr.bf16.mxu0 %v4446_v18 }
 0x484   : > { %3892 = vmatmul.mubr.msk.bf16.vlgmr.msra.gmra.mxu1 %vm703_vm2, %v2181_v60 }
 0x485   : > { %3903 = vmatprep.mubr.msk.bf16.mxu1 %vm4447_vm3, %v4446_v18 }
 0x51e   : > { %v1723_v42 = vpop.f32.mrf.mxu0 }
 0x520   : > { %v3839_v7 = vpop.f32.mrf.mxu0 }
 0x522   : > { %v1726_v5 = vpop.f32.mrf.mxu0 }
 0x524   : > { %v3840_v15 = vpop.f32.mrf.mxu0  ;;  %v1771_v17 = vpop.f32.mrf.mxu1 }
 0x526   : > { %v3845_v22 = vpop.f32.mrf.mxu1 }
 0x528   : > { %v1774_v29 = vpop.f32.mrf.mxu1  ;;  %v1819_v38 = vpop.f32.mrf.mxu0 }
 0x52a   : > { %v3846_v44 = vpop.f32.mrf.mxu1  ;;  %v3851_v47 = vpop.f32.mrf.mxu0 }
 0x52c   : > { %v1822_v54 = vpop.f32.mrf.mxu0  ;;  %v1867_v58 = vpop.f32.mrf.mxu1 }
 0x52e   : > { %v3852_v59 = vpop.f32.mrf.mxu0  ;;  %v3857_v62 = vpop.f32.mrf.mxu1 }
 0x530   : > { %v1870_v43 = vpop.f32.mrf.mxu1  ;;  %v3863_v53 = vpop.f32.mrf.mxu0 }
 0x531   : > { %v5081_v2 = vadd.f32 %v3863_v53, %v1819_v38 }
 0x532   : > { %v3858_v4 = vpop.f32.mrf.mxu1  ;;  %v1926_v6 = vpop.f32.mrf.mxu0 }
 0x533   : > { %v5083_v8 = vadd.f32 %v1926_v6, %v1723_v42 }
 0x534   : > { %v3864_v48 = vpop.f32.mrf.mxu0  ;;  %v5085_v56 = vpop.f32.mrf.mxu1 }
 0x535   : > { %v5087_v36 = vadd.f32 %v3864_v48, %v1867_v58  ;;  %v2236_v9 = vsel %vm976_vm5, %v5085_v56, -inf }
 0x536   : > { %v1929_v10 = vpop.f32.mrf.mxu0  ;;  %2237 = vmax.xlane.f32.xlu1 %v2236_v9  ;;  %v5091_v51 = vpop.f32.mrf.mxu1 }
 0x537   : > { %v5093_v60 = vadd.f32 %v1929_v10, %v1771_v17  ;;  %v2230_v15 = vsel %vm976_vm5, %v5091_v51, -inf }
 0x538   : > { %v5095_v7 = vpop.f32.mrf.mxu1  ;;  %v2074_v5 = vpop.f32.mrf.mxu0 }
 0x539   : > { %v2242_v42 = vsel %vm703_vm2, %v2074_v5, -inf  ;;  %v2239_v47 = vsel %vm976_vm5, %v5095_v7, -inf }
 0x53a   : > { %2243 = vmax.xlane.f32.xlu0 %v2242_v42  ;;  %v3875_v22 = vpop.f32.mrf.mxu0  ;;  %2231 = vmax.xlane.f32.xlu1 %v2230_v15  ;;  %v2018_v29 = vpop.f32.mrf.mxu1 }
 0x53b   : > { %v2233_v17 = vsel %vm976_vm5, %v2018_v29, -inf }
 0x53c   : > { %v2077_v38 = vpop.f32.mrf.mxu0  ;;  %v2124_v44 = vpop.f32.mrf.mxu1 }
 0x53d   : > { %v2245_v43 = vsel %vm703_vm2, %v2124_v44, -inf }
 0x53e   : > { %v3876_v54 = vpop.f32.mrf.mxu0  ;;  %2240 = vmax.xlane.f32.xlu1 %v2239_v47  ;;  %2234 = vmax.xlane.f32.xlu0 %v2233_v17  ;;  %v3881_v58 = vpop.f32.mrf.mxu1 }
 0x540   : > { %v2127_v59 = vpop.f32.mrf.mxu1  ;;  %v2174_v62 = vpop.f32.mrf.mxu0 }
 0x541   : > { %v2248_v9 = vsel %vm703_vm2, %v2174_v62, -inf }
 0x542   : > { %v3887_v53 = vpop.f32.mrf.mxu0  ;;  %2246 = vmax.xlane.f32.xlu0 %v2245_v43  ;;  %v3882_v4 = vpop.f32.mrf.mxu1 }
 0x544   : > { %v2177_v6 = vpop.f32.mrf.mxu0  ;;  %v2224_v48 = vpop.f32.mrf.mxu1 }
 0x545   : > { %v2251_v22 = vsel %vm703_vm2, %v2224_v48, -inf }
 0x546   : > { %v3888_v10 = vpop.f32.mrf.mxu0  ;;  %2249 = vmax.xlane.f32.xlu0 %v2248_v9  ;;  %v3893_v42 = vpop.f32.mrf.mxu1 }
 0x548   : > { %v2227_v15 = vpop.f32.mrf.mxu1 }
 0x54a   : > { %2252 = vmax.xlane.f32.xlu0 %v2251_v22  ;;  %v3894_v38 = vpop.f32.mrf.mxu1 }
 0x54f   : > { %2416 = vrot.lane.b32.xlu1 %v4847_v52, %s4450_s8 }
 0x553   : > { %2464 = vrot.lane.b32.xlu1 %v4858_v61, %s4450_s8 }
 0x557   : > { %2512 = vrot.lane.b32.xlu1 %v4971_v12, %s4450_s8 }
 0x55b   : > { %2663 = vrot.lane.b32.xlu1 %v4722_v23, %s4451_s0 }
 0x55f   : > { %2599 = vrot.lane.b32.xlu1 %v4728_v30, %s4451_s0 }
 0x560   : > { %2368 = vrot.lane.b32.xlu0 %v4782_v46, %s4450_s8 }
 0x563   : > { %2713 = vrot.lane.b32.xlu1 %v4730_v31, %s4451_s0 }
 0x564   : > { %2601 = vrot.lane.b32.xlu0 %v4817_v20, %s4451_s0 }
 0x567   : > { %2711 = vrot.lane.b32.xlu1 %v4754_v37, %s4451_s0 }
 0x568   : > { %2597 = vrot.lane.b32.xlu0 %v4726_v28, %s4451_s0 }
 0x56b   : > { %2813 = vrot.lane.b32.xlu1 %v4746_v35, %s4451_s0 }
 0x56c   : > { %2661 = vrot.lane.b32.xlu0 %v4743_v34, %s4451_s0 }
 0x56f   : > { %2951 = vrot.lane.b32.xlu1 %v4780_v45, %s4451_s0 }
 0x570   : > { %2763 = vrot.lane.b32.xlu0 %v4735_v32, %s4451_s0 }
 0x574   : > { %2761 = vrot.lane.b32.xlu0 %v4763_v39, %s4451_s0 }
 0x578   : > { %2811 = vrot.lane.b32.xlu0 %v4770_v40, %s4451_s0 }
 0x5bf   : > { %v2238_v23 = vpop.xlane.xlu1 %2237 }
 0x5c3   : > { %v2244_v28 = vpop.xlane.xlu0 %2243  ;;  %v2232_v30 = vpop.xlane.xlu1 %2231 }
 0x5c4   : > { %v2254_v31 = vmax.f32 %v2232_v30, %v2244_v28 }
 0x5c6   : > { %v2270_v35 = vsub.f32 %v2074_v5, %v2254_v31  ;;  %v2258_v39 = vsub.f32 %v5091_v51, %v2254_v31 }
 0x5c7   : > { %v2241_v37 = vpop.xlane.xlu1 %2240  ;;  %v2235_v20 = vpop.xlane.xlu0 %2234 }
 0x5c8   : > { %v2274_v34 = vmul.f32 1.442695, %v2270_v35  ;;  %v2262_v5 = vmul.f32 1.442695, %v2258_v39 }
 0x5ca   : > { %4143 = vpow2.f32 %v2274_v34 }
 0x5cb   : > { %v2247_v47 = vpop.xlane.xlu0 %2246  ;;  %v2417_v45 = vpop.permute.xlu1 %2416 }
 0x5cc   : > { %v2255_v17 = vmax.f32 %v2235_v20, %v2247_v47 }
 0x5ce   : > { %v2259_v54 = vsub.f32 %v2018_v29, %v2255_v17  ;;  %v2271_v32 = vsub.f32 %v2124_v44, %v2255_v17 }
 0x5cf   : > { %v2250_v58 = vpop.xlane.xlu0 %2249  ;;  %v2465_v53 = vpop.permute.xlu1 %2464 }
 0x5d0   : > { %v2276_v59 = vmul.f32 1.442695, %v2271_v32  ;;  %v2256_v43 = vmax.f32 %v2238_v23, %v2250_v58  ;;  %v2264_v40 = vmul.f32 1.442695, %v2259_v54  ;;  %v2470_v20 = vsel %vm1070_vm4, %v2465_v53, 0 }
 0x5d2   : > { %v2272_v4 = vsub.f32 %v2174_v62, %v2256_v43  ;;  %4145 = vpow2.f32 %v2276_v59  ;;  %v2260_v29 = vsub.f32 %v5085_v56, %v2256_v43 }
 0x5d3   : > { %v2253_v6 = vpop.xlane.xlu0 %2252  ;;  %4147 = vpow2.f32 %v2264_v40  ;;  %v2513_v51 = vpop.permute.xlu1 %2512 }
 0x5d4   : > { %v2278_v9 = vmul.f32 1.442695, %v2272_v4  ;;  %v2257_v10 = vmax.f32 %v2241_v37, %v2253_v6  ;;  %v2521_v17 = vsel %vm1258_vm6, %v2513_v51, 0 }
 0x5d6   : > { %v2261_v42 = vsub.f32 %v5095_v7, %v2257_v10  ;;  %v2273_v15 = vsub.f32 %v2224_v48, %v2257_v10  ;;  %4149 = vpow2.f32 %v2278_v9  ;;  %v2422_v7 = vsel %vm1070_vm4, %v2417_v45, 0 }
 0x5d7   : > { %v2369_v44 = vpop.permute.xlu0 %2368  ;;  %v5141_v22 = vpop.eup %4143  ;;  %4151 = vpow2.f32 %v2262_v5  ;;  %v2266_v48 = vmul.f32 1.442695, %v2260_v29 }
 0x5d8   : > { %v2280_v38 = vmul.f32 1.442695, %v2273_v15  ;;  %v2374_v62 = vsel %vm1070_vm4, %v2369_v44, 0  ;;  %v2268_v23 = vmul.f32 1.442695, %v2261_v42  ;;  %v2316_v28 = vpack.c.bf16 %v5141_v22, %v5141_v22  ;;  %v2664_v56 = vpop.permute.xlu1 %2663 }
 0x5d9   : > { %3902 = vmatpush3.bf16.msra.mxu1 %v2374_v62  ;;  %v2669_v9 = vsel %vm703_vm2, %v2664_v56, 0 }
 0x5da   : > { %3913 = vmatprep.subr.bf16.mxu1 %v4446_v18  ;;  %4153 = vpow2.f32 %v2280_v38  ;;  %3898 = vmatmul.mubr.msk.bf16.vlgmr.msra.gmra.mxu0 %vm703_vm2, %v2316_v28 }
 0x5db   : > { %3908 = vmatpush3.bf16.msra.mxu0 %v2422_v7  ;;  %3909 = vmatprep.mubr.msk.bf16.mxu0 %vm4447_vm3, %v4446_v18  ;;  %4155 = vpow2.f32 %v2268_v23  ;;  %v2602_v35 = vpop.permute.xlu0 %2601 }
 0x5dc   : > { %3998 = vmatprep.subr.msk.bf16.mxu0 %vm1258_vm6, %v2513_v51  ;;  %4157 = vpow2.f32 %v2266_v48  ;;  %v2600_v47 = vpop.permute.xlu1 %2599  ;;  %v2610_v59 = vsel %vm703_vm2, %v2602_v35, 0 }
 0x5df   : > { %v5152_v30 = vpop.eup %4145  ;;  %v2598_v39 = vpop.permute.xlu0 %2597 }
 0x5e0   : > { %v2317_v31 = vpack.c.bf16 %v5152_v30, %v5152_v30  ;;  %v5156_v37 = vpop.eup %4147  ;;  %v2714_v53 = vpop.permute.xlu1 %2713 }
 0x5e1   : > { %v2719_v42 = vsel %vm703_vm2, %v2714_v53, 0 }
 0x5e2   : > { %3904 = vmatmul.mubr.msk.bf16.vlgmr.msra.gmra.mxu1 %vm703_vm2, %v2317_v31 }
 0x5e3   : > { %v5160_v34 = vpop.eup %4149  ;;  %3914 = vmatpush3.bf16.msra.mxu1 %v2470_v20  ;;  %3915 = vmatprep.mubr.msk.bf16.mxu1 %vm4447_vm3, %v4446_v18  ;;  %v2662_v5 = vpop.permute.xlu0 %2661 }
 0x5e4   : > { %v5164_v45 = vpop.eup %4151  ;;  %v2318_v54 = vpack.c.bf16 %v5160_v34, %v5160_v34  ;;  %3999 = vmatprep.subr.msk.bf16.mxu1 %vm703_vm2, %v2602_v35  ;;  %v2712_v10 = vpop.permute.xlu1 %2711 }
 0x5e5   : > { %v2314_v32 = vpack.c.bf16 %v5156_v37, %v5164_v45 }
 0x5e6   : > { %3910 = vmatmul.mubr.msk.bf16.vlgmr.msra.gmra.mxu0 %vm703_vm2, %v2318_v54 }
 0x5e7   : > { %v5173_v58 = vpop.eup %4153  ;;  %3920 = vmatpush3.bf16.msra.mxu0 %v2521_v17  ;;  %3921 = vmatprep.mubr.msk.bf16.mxu0 %vm976_vm5, %v2314_v32  ;;  %v2764_v15 = vpop.permute.xlu0 %2763 }
 0x5e8   : > { %v2319_v43 = vpack.c.bf16 %v5173_v58, %v5173_v58  ;;  %3931 = vmatprep.subr.bf16.mxu0 %v4446_v18  ;;  %v5180_v40 = vpop.eup %4155  ;;  %v2814_v29 = vpop.permute.xlu1 %2813  ;;  %v2769_v44 = vsel %vm703_vm2, %v2764_v15, 0 }
 0x5e9   : > { %v5183_v4 = vpop.eup %4157  ;;  %v2819_v51 = vsel %vm703_vm2, %v2814_v29, 0 }
 0x5ea   : > { %3916 = vmatmul.mubr.msk.bf16.vlgmr.msra.gmra.mxu1 %vm703_vm2, %v2319_v43  ;;  %v2315_v6 = vpack.c.bf16 %v5180_v40, %v5183_v4 }
 0x5eb   : > { %3926 = vmatpush3.bf16.xpose.msra.mxu1 %v2610_v59  ;;  %3927 = vmatprep.mubr.msk.bf16.mxu1 %vm703_vm2, %v2598_v39  ;;  %v2762_v62 = vpop.permute.xlu0 %2761 }
 0x5ec   : > { %3937 = vmatprep.subr.bf16.mxu1 %v4446_v18  ;;  %v2952_v38 = vpop.permute.xlu1 %2951 }
 0x5ed   : > { %v2957_v23 = vsel %vm1070_vm4, %v2952_v38, 0 }
 0x5ee   : > { %3922 = vmatmul.mubr.msk.bf16.vlgmr.msra.gmra.mxu0 %vm976_vm5, %v2315_v6 }
 0x5ef   : > { %3932 = vmatpush3.bf16.xpose.msra.mxu0 %v2669_v9  ;;  %3933 = vmatprep.mubr.msk.bf16.mxu0 %vm4447_vm3, %v4446_v18  ;;  %v2812_v28 = vpop.permute.xlu0 %2811 }
 0x5f0   : > { %3943 = vmatprep.subr.bf16.mxu0 %v4446_v18 }
 0x5f2   : > { %3928 = vmatmul.mubr.msk.bf16.vlgmr.msra.gmra.mxu1 %vm703_vm2, %v2600_v47 }
 0x5f3   : > { %3938 = vmatpush3.bf16.xpose.msra.mxu1 %v2719_v42  ;;  %3939 = vmatprep.mubr.msk.bf16.mxu1 %vm4447_vm3, %v4446_v18 }
 0x5f4   : > { %3949 = vmatprep.subr.bf16.mxu1 %v4446_v18 }
 0x5f6   : > { %3934 = vmatmul.mubr.msk.bf16.vlgmr.msra.gmra.mxu0 %vm703_vm2, %v2662_v5 }
 0x5f7   : > { %3944 = vmatpush3.bf16.xpose.msra.mxu0 %v2769_v44  ;;  %3945 = vmatprep.mubr.msk.bf16.mxu0 %vm4447_vm3, %v4446_v18 }
 0x5f8   : > { %3955 = vmatprep.subr.bf16.mxu0 %v4446_v18 }
 0x5fa   : > { %3940 = vmatmul.mubr.msk.bf16.vlgmr.msra.gmra.mxu1 %vm703_vm2, %v2712_v10 }
 0x5fb   : > { %3950 = vmatpush3.bf16.xpose.msra.mxu1 %v2819_v51  ;;  %3951 = vmatprep.mubr.msk.bf16.mxu1 %vm4447_vm3, %v4446_v18 }
 0x5fc   : > { %3961 = vmatprep.subr.bf16.mxu1 %v4446_v18 }
 0x5fe   : > { %3946 = vmatmul.mubr.msk.bf16.vlgmr.msra.gmra.mxu0 %vm703_vm2, %v2762_v62 }
 0x5ff   : > { %3956 = vmatpush3.bf16.msra.mxu0 %v2957_v23  ;;  %3957 = vmatprep.mubr.msk.bf16.mxu0 %vm4447_vm3, %v4446_v18 }
 0x600   : > { %3967 = vmatprep.subr.bf16.mxu0 %v4446_v18 }
 0x602   : > { %3952 = vmatmul.mubr.msk.bf16.vlgmr.msra.gmra.mxu1 %vm703_vm2, %v2812_v28 }
 0x603   : > { %3963 = vmatprep.mubr.msk.bf16.mxu1 %vm4447_vm3, %v4446_v18 }
 0x69a   : > { %v2362_v7 = vpop.f32.mrf.mxu0 }
 0x69c   : > { %v3899_v48 = vpop.f32.mrf.mxu0 }
 0x69e   : > { %v2365_v56 = vpop.f32.mrf.mxu0 }
 0x6a0   : > { %v3900_v31 = vpop.f32.mrf.mxu0 }
 0x6a2   : > { %v2410_v35 = vpop.f32.mrf.mxu1 }
 0x6a4   : > { %v3905_v20 = vpop.f32.mrf.mxu1 }
 0x6a6   : > { %v2413_v47 = vpop.f32.mrf.mxu1  ;;  %v2458_v17 = vpop.f32.mrf.mxu0 }
 0x6a8   : > { %v3906_v54 = vpop.f32.mrf.mxu1  ;;  %v3911_v32 = vpop.f32.mrf.mxu0 }
 0x6aa   : > { %v2461_v39 = vpop.f32.mrf.mxu0  ;;  %v2506_v59 = vpop.f32.mrf.mxu1 }
 0x6ac   : > { %v3912_v43 = vpop.f32.mrf.mxu0  ;;  %v3917_v53 = vpop.f32.mrf.mxu1 }
 0x6ae   : > { %v2509_v6 = vpop.f32.mrf.mxu1  ;;  %v3923_v5 = vpop.f32.mrf.mxu0 }
 0x6af   : > { %v5217_v9 = vadd.f32 %v3923_v5, %v2458_v17 }
 0x6b0   : > { %v3918_v10 = vpop.f32.mrf.mxu1  ;;  %v2557_v42 = vpop.f32.mrf.mxu0 }
 0x6b1   : > { %v5219_v15 = vadd.f32 %v2557_v42, %v2362_v7 }
 0x6b2   : > { %v3924_v29 = vpop.f32.mrf.mxu0  ;;  %v5221_v44 = vpop.f32.mrf.mxu1 }
 0x6b3   : > { %v5223_v51 = vadd.f32 %v3924_v29, %v2506_v59  ;;  %v2867_v38 = vsel %vm976_vm5, %v5221_v44, -inf }
 0x6b4   : > { %v2560_v62 = vpop.f32.mrf.mxu0  ;;  %2868 = vmax.xlane.f32.xlu0 %v2867_v38  ;;  %v5227_v23 = vpop.f32.mrf.mxu1 }
 0x6b5   : > { %v5229_v28 = vadd.f32 %v2560_v62, %v2410_v35  ;;  %v2861_v48 = vsel %vm976_vm5, %v5227_v23, -inf }
 0x6b6   : > { %v5233_v56 = vpop.f32.mrf.mxu0  ;;  %2862 = vmax.xlane.f32.xlu1 %v2861_v48  ;;  %v5235_v7 = vpop.f32.mrf.mxu1 }
 0x6b7   : > { %v2873_v31 = vsel %vm703_vm2, %v5233_v56, -inf  ;;  %v2870_v17 = vsel %vm976_vm5, %v5235_v7, -inf }
 0x6b8   : > { %v3935_v20 = vpop.f32.mrf.mxu0  ;;  %2874 = vmax.xlane.f32.xlu0 %v2873_v31  ;;  %v5239_v47 = vpop.f32.mrf.mxu1 }
 0x6b9   : > { %v2864_v43 = vsel %vm976_vm5, %v5239_v47, -inf }
 0x6ba   : > { %v2708_v35 = vpop.f32.mrf.mxu0  ;;  %2871 = vmax.xlane.f32.xlu1 %v2870_v17  ;;  %v5243_v54 = vpop.f32.mrf.mxu1 }
 0x6bb   : > { %v2876_v32 = vsel %vm703_vm2, %v5243_v54, -inf  ;;  %v1643_v35 = vsel %vm976_vm5, %v5028_v33, 0.0  ;;  %v1661_v33 = vsel %vm703_vm2, %v5024_v27, 0.0  ;;  %v2303_v27 = vsel %vm703_vm2, %v5173_v58, 0.0 }
 0x6bc   : > { %v3936_v39 = vpop.f32.mrf.mxu0  ;;  %2877 = vmax.xlane.f32.xlu0 %v2876_v32  ;;  %v3941_v59 = vpop.f32.mrf.mxu1  ;;  %v1646_v32 = vsel %vm976_vm5, %v5020_v16, 0.0  ;;  %v1649_v16 = vsel %vm976_vm5, %v5047_v63, 0.0  ;;  %v2294_v63 = vsel %vm703_vm2, %v5141_v22, 0.0 }
 0x6be   : > { %v5249_v53 = vpop.f32.mrf.mxu0  ;;  %2865 = vmax.xlane.f32.xlu1 %v2864_v43  ;;  %v2758_v6 = vpop.f32.mrf.mxu1 }
 0x6bf   : > { %v2879_v5 = vsel %vm703_vm2, %v5249_v53, -inf }
 0x6c0   : > { %v3947_v10 = vpop.f32.mrf.mxu0  ;;  %2880 = vmax.xlane.f32.xlu0 %v2879_v5  ;;  %v3942_v42 = vpop.f32.mrf.mxu1 }
 0x6c2   : > { %v2808_v29 = vpop.f32.mrf.mxu0  ;;  %v5253_v38 = vpop.f32.mrf.mxu1 }
 0x6c3   : > { %v2882_v62 = vsel %vm703_vm2, %v5253_v38, -inf }
 0x6c4   : > { %v3948_v48 = vpop.f32.mrf.mxu0  ;;  %2883 = vmax.xlane.f32.xlu0 %v2882_v62  ;;  %v3953_v31 = vpop.f32.mrf.mxu1 }
 0x6c6   : > { %v2858_v20 = vpop.f32.mrf.mxu1 }
 0x6c8   : > { %v3954_v17 = vpop.f32.mrf.mxu1 }
 0x6cf   : > { %2999 = vrot.lane.b32.xlu1 %v4782_v46, %s4451_s0  ;;  %v1655_v46 = vsel %vm703_vm2, %v5006_v19, 0.0  ;;  %v2285_v19 = vsel %vm976_vm5, %v5156_v37, 0.0  ;;  %v2300_v37 = vsel %vm703_vm2, %v5160_v34, 0.0 }
 0x6d3   : > { %3143 = vrot.lane.b32.xlu1 %v4971_v12, %s4451_s0  ;;  %v1652_v12 = vsel %vm976_vm5, %v5044_v50, 0.0  ;;  %v2291_v50 = vsel %vm976_vm5, %v5180_v40, 0.0 }
 0x6d7   : > { %3095 = vrot.lane.b32.xlu1 %v4858_v61, %s4451_s0  ;;  %v1658_v61 = vsel %vm703_vm2, %v5016_v13, 0.0  ;;  %v2297_v13 = vsel %vm703_vm2, %v5152_v30, 0.0  ;;  %v2288_v30 = vsel %vm976_vm5, %v5183_v4, 0.0 }
 0x6da   : > { %3047 = vrot.lane.b32.xlu0 %v4847_v52, %s4451_s0  ;;  %v1664_v52 = vsel %vm703_vm2, %v5037_v57, 0.0  ;;  %v2282_v57 = vsel %vm976_vm5, %v5164_v45, 0.0 }
 0x6f9   : > { %1644 = vadd.xlane.f32.xlu0 %v1643_v35 }
 0x6fb   : > { %1647 = vadd.xlane.f32.xlu1 %v1646_v32 }
 0x6fd   : > { %1656 = vadd.xlane.f32.xlu0 %v1655_v46 }
 0x6ff   : > { %1653 = vadd.xlane.f32.xlu1 %v1652_v12 }
 0x701   : > { %1659 = vadd.xlane.f32.xlu0 %v1658_v61 }
 0x703   : > { %1665 = vadd.xlane.f32.xlu1 %v1664_v52 }
 0x705   : > { %1650 = vadd.xlane.f32.xlu0 %v1649_v16 }
 0x707   : > { %2286 = vadd.xlane.f32.xlu1 %v2285_v19 }
 0x709   : > { %1662 = vadd.xlane.f32.xlu0 %v1661_v33 }
 0x70b   : > { %2298 = vadd.xlane.f32.xlu1 %v2297_v13 }
 0x70d   : > { %2283 = vadd.xlane.f32.xlu0 %v2282_v57 }
 0x70f   : > { %2292 = vadd.xlane.f32.xlu1 %v2291_v50 }
 0x711   : > { %2295 = vadd.xlane.f32.xlu0 %v2294_v63 }
 0x713   : > { %2304 = vadd.xlane.f32.xlu1 %v2303_v27 }
 0x715   : > { %2289 = vadd.xlane.f32.xlu0 %v2288_v30 }
 0x719   : > { %2301 = vadd.xlane.f32.xlu0 %v2300_v37 }
 0x73d   : > { %v2869_v45 = vpop.xlane.xlu0 %2868 }
 0x73f   : > { %v2863_v39 = vpop.xlane.xlu1 %2862 }
 0x741   : > { %v2875_v40 = vpop.xlane.xlu0 %2874 }
 0x742   : > { %v2885_v59 = vmax.f32 %v2863_v39, %v2875_v40 }
 0x743   : > { %v2872_v43 = vpop.xlane.xlu1 %2871 }
 0x744   : > { %v2889_v22 = vsub.f32 %v5227_v23, %v2885_v59  ;;  %v2901_v6 = vsub.f32 %v5233_v56, %v2885_v59 }
 0x745   : > { %v2878_v5 = vpop.xlane.xlu0 %2877 }
 0x746   : > { %v2893_v58 = vmul.f32 1.442695, %v2889_v22  ;;  %v2905_v10 = vmul.f32 1.442695, %v2901_v6 }
 0x747   : > { %v2866_v42 = vpop.xlane.xlu1 %2865 }
 0x748   : > { %4159 = vpow2.f32 %v2893_v58  ;;  %v2886_v4 = vmax.f32 %v2866_v42, %v2878_v5 }
 0x749   : > { %4161 = vpow2.f32 %v2905_v10  ;;  %v2881_v29 = vpop.xlane.xlu0 %2880 }
 0x74a   : > { %v2890_v34 = vsub.f32 %v5239_v47, %v2886_v4  ;;  %v2902_v62 = vsub.f32 %v5243_v54, %v2886_v4  ;;  %v2887_v48 = vmax.f32 %v2869_v45, %v2881_v29 }
 0x74b   : > { %v3000_v31 = vpop.permute.xlu1 %2999 }
 0x74c   : > { %v2895_v20 = vmul.f32 1.442695, %v2890_v34  ;;  %v2907_v17 = vmul.f32 1.442695, %v2902_v62  ;;  %v2891_v23 = vsub.f32 %v5221_v44, %v2887_v48  ;;  %v2903_v56 = vsub.f32 %v5249_v53, %v2887_v48 }
 0x74d   : > { %v3005_v35 = vsel %vm1070_vm4, %v3000_v31, 0  ;;  %v2884_v32 = vpop.xlane.xlu0 %2883  ;;  %v1029_v34 = vsel %vm976_vm5, %v4880_v3, 0.0  ;;  %v1041_v48 = vsel %vm703_vm2, %v4849_v55, 0.0  ;;  %v1032_v31 = vsel %vm976_vm5, %v4871_v0, 0.0 }
 0x74e   : > { %4163 = vpow2.f32 %v2895_v20  ;;  %v2897_v46 = vmul.f32 1.442695, %v2891_v23  ;;  %v2909_v12 = vmul.f32 1.442695, %v2903_v56  ;;  %3962 = vmatpush3.bf16.msra.mxu1 %v3005_v35  ;;  %v2888_v61 = vmax.f32 %v2872_v43, %v2884_v32 }
 0x74f   : > { %4165 = vpow2.f32 %v2907_v17  ;;  %3973 = vmatprep.subr.bf16.mxu1 %v4446_v18  ;;  %v3144_v19 = vpop.permute.xlu1 %3143  ;;  %v1035_v3 = vsel %vm976_vm5, %v4895_v24, 0.0  ;;  %v1044_v20 = vsel %vm703_vm2, %v4863_v41, 0.0  ;;  %v1047_v17 = vsel %vm703_vm2, %v4876_v1, 0.0 }
 0x750   : > { %4167 = vpow2.f32 %v2897_v46  ;;  %v2892_v47 = vsub.f32 %v5235_v7, %v2888_v61  ;;  %v2904_v54 = vsub.f32 %v5253_v38, %v2888_v61  ;;  %v3152_v59 = vsel %vm1258_vm6, %v3144_v19, 0 }
 0x751   : > { %4169 = vpow2.f32 %v2909_v12  ;;  %v3048_v33 = vpop.permute.xlu0 %3047  ;;  %v1038_v55 = vsel %vm976_vm5, %v4897_v25, 0.0  ;;  %v1050_v0 = vsel %vm703_vm2, %v4899_v49, 0.0 }
 0x752   : > { %v2899_v44 = vmul.f32 1.442695, %v2892_v47  ;;  %v2911_v52 = vmul.f32 1.442695, %v2904_v54  ;;  %v3053_v50 = vsel %vm1070_vm4, %v3048_v33, 0 }
 0x753   : > { %v3096_v27 = vpop.permute.xlu1 %3095 }
 0x754   : > { %4171 = vpow2.f32 %v2899_v44  ;;  %v3101_v43 = vsel %vm1070_vm4, %v3096_v27, 0 }
 0x755   : > { %v4160_v53 = vpop.eup %4159  ;;  %4173 = vpow2.f32 %v2911_v52 }
 0x756   : > { %v4162_v16 = vpop.eup %4161  ;;  %v2913_v13 = vsel %vm976_vm5, %v4160_v53, 0.0 }
 0x757   : > { %2914 = vadd.xlane.f32.xlu0 %v2913_v13  ;;  %v2947_v57 = vpack.c.bf16 %v4162_v16, %v4162_v16  ;;  %v2925_v7 = vsel %vm703_vm2, %v4162_v16, 0.0 }
 0x759   : > { %3958 = vmatmul.mubr.msk.bf16.vlgmr.msra.gmra.mxu0 %vm703_vm2, %v2947_v57 }
 0x75a   : > { %3968 = vmatpush3.bf16.msra.mxu0 %v3053_v50  ;;  %3969 = vmatprep.mubr.msk.bf16.mxu0 %vm4447_vm3, %v4446_v18 }
 0x75b   : > { %v4164_v38 = vpop.eup %4163  ;;  %2926 = vadd.xlane.f32.xlu0 %v2925_v7  ;;  %4000 = vmatprep.subr.msk.bf16.mxu0 %vm1258_vm6, %v3144_v19 }
 0x75c   : > { %v4166_v63 = vpop.eup %4165  ;;  %v2916_v30 = vsel %vm976_vm5, %v4164_v38, 0.0  ;;  %v2945_v5 = vpack.c.bf16 %v4164_v38, %v4160_v53 }
 0x75d   : > { %v4168_v37 = vpop.eup %4167  ;;  %2917 = vadd.xlane.f32.xlu1 %v2916_v30  ;;  %v2948_v45 = vpack.c.bf16 %v4166_v63, %v4166_v63  ;;  %v2928_v6 = vsel %vm703_vm2, %v4166_v63, 0.0 }
 0x75e   : > { %v4170_v39 = vpop.eup %4169  ;;  %v2919_v40 = vsel %vm976_vm5, %v4168_v37, 0.0 }
 0x75f   : > { %3964 = vmatmul.mubr.msk.bf16.vlgmr.msra.gmra.mxu1 %vm703_vm2, %v2948_v45  ;;  %2920 = vadd.xlane.f32.xlu0 %v2919_v40  ;;  %v2949_v22 = vpack.c.bf16 %v4170_v39, %v4170_v39  ;;  %v2931_v42 = vsel %vm703_vm2, %v4170_v39, 0.0 }
 0x760   : > { %3974 = vmatpush3.bf16.msra.mxu1 %v3101_v43  ;;  %3975 = vmatprep.mubr.msk.bf16.mxu1 %vm4447_vm3, %v4446_v18 }
 0x761   : > { %v4172_v58 = vpop.eup %4171  ;;  %3970 = vmatmul.mubr.msk.bf16.vlgmr.msra.gmra.mxu0 %vm703_vm2, %v2949_v22  ;;  %2929 = vadd.xlane.f32.xlu1 %v2928_v6 }
 0x762   : > { %v4174_v10 = vpop.eup %4173  ;;  %3980 = vmatpush3.bf16.msra.mxu0 %v3152_v59  ;;  %3981 = vmatprep.mubr.msk.bf16.mxu0 %vm976_vm5, %v2945_v5  ;;  %v2922_v4 = vsel %vm976_vm5, %v4172_v58, 0.0  ;;  %v2946_v18 = vpack.c.bf16 %v4172_v58, %v4168_v37 }
 0x763   : > { %2932 = vadd.xlane.f32.xlu0 %v2931_v42  ;;  %v2950_v29 = vpack.c.bf16 %v4174_v10, %v4174_v10  ;;  %v2934_v62 = vsel %vm703_vm2, %v4174_v10, 0.0 }
 0x765   : > { %2923 = vadd.xlane.f32.xlu1 %v2922_v4 }
 0x767   : > { %3976 = vmatmul.mubr.msk.bf16.vlgmr.msra.gmra.mxu1 %vm703_vm2, %v2950_v29  ;;  %1030 = vadd.xlane.f32.xlu0 %v1029_v34 }
 0x769   : > { %3982 = vmatmul.mubr.msk.bf16.vlgmr.msra.gmra.mxu0 %vm976_vm5, %v2946_v18  ;;  %2935 = vadd.xlane.f32.xlu1 %v2934_v62 }
 0x76b   : > { %1042 = vadd.xlane.f32.xlu0 %v1041_v48 }
 0x76d   : > { %1033 = vadd.xlane.f32.xlu1 %v1032_v31 }
 0x76f   : > { %1036 = vadd.xlane.f32.xlu0 %v1035_v3 }
 0x771   : > { %1045 = vadd.xlane.f32.xlu1 %v1044_v20 }
 0x773   : > { %1048 = vadd.xlane.f32.xlu0 %v1047_v17 }
 0x775   : > { %1039 = vadd.xlane.f32.xlu1 %v1038_v55 }
 0x779   : > { %1051 = vadd.xlane.f32.xlu1 %v1050_v0 }
 0x782   : > { %v1645_v23 = vpop.xlane.xlu0 %1644 }
 0x784   : > { %v1648_v56 = vpop.xlane.xlu1 %1647 }
 0x786   : > { %v1657_v24 = vpop.xlane.xlu0 %1656 }
 0x787   : > { %v1667_v35 = vadd.f32 %v1657_v24, %v1645_v23 }
 0x788   : > { %v1654_v32 = vpop.xlane.xlu1 %1653 }
 0x789   : > { %4175 = vrcp.f32 %v1667_v35 }
 0x78a   : > { %v1660_v41 = vpop.xlane.xlu0 %1659 }
 0x78b   : > { %v1668_v46 = vadd.f32 %v1660_v41, %v1648_v56 }
 0x78c   : > { %v1666_v12 = vpop.xlane.xlu1 %1665 }
 0x78d   : > { %4177 = vrcp.f32 %v1668_v46  ;;  %v1670_v54 = vadd.f32 %v1666_v12, %v1654_v32 }
 0x78e   : > { %v1651_v1 = vpop.xlane.xlu0 %1650 }
 0x790   : > { %v2287_v61 = vpop.xlane.xlu1 %2286 }
 0x792   : > { %v1663_v47 = vpop.xlane.xlu0 %1662 }
 0x793   : > { %v1669_v25 = vadd.f32 %v1663_v47, %v1651_v1 }
 0x794   : > { %v2299_v44 = vpop.xlane.xlu1 %2298 }
 0x795   : > { %4179 = vrcp.f32 %v1669_v25  ;;  %v2307_v53 = vadd.f32 %v2299_v44, %v2287_v61 }
 0x796   : > { %v4176_v52 = vpop.eup %4175  ;;  %v2284_v49 = vpop.xlane.xlu0 %2283  ;;  %4181 = vrcp.f32 %v1670_v54 }
 0x797   : > { %v1941_v16 = vmul.f32 %v4176_v52, %v5083_v8  ;;  %4183 = vrcp.f32 %v2307_v53 }
 0x798   : > { %v2293_v19 = vpop.xlane.xlu1 %2292 }
 0x799   : > { %1949 = vrot.lane.b32.xlu0 %v1941_v16, %s4452_s18 }
 0x79a   : > { %v4178_v33 = vpop.eup %4177  ;;  %v2296_v13 = vpop.xlane.xlu0 %2295 }
 0x79b   : > { %v2306_v57 = vadd.f32 %v2296_v13, %v2284_v49  ;;  %v1942_v50 = vmul.f32 %v4178_v33, %v5093_v60 }
 0x79c   : > { %v2305_v7 = vpop.xlane.xlu1 %2304 }
 0x79d   : > { %4185 = vrcp.f32 %v2306_v57  ;;  %v2309_v38 = vadd.f32 %v2305_v7, %v2293_v19  ;;  %1951 = vrot.lane.b32.xlu1 %v1942_v50, %s4452_s18 }
 0x79e   : > { %v2290_v63 = vpop.xlane.xlu0 %2289 }
 0x79f   : > { %4187 = vrcp.f32 %v2309_v38 }
 0x7a2   : > { %v4180_v27 = vpop.eup %4179  ;;  %v2302_v30 = vpop.xlane.xlu0 %2301 }
 0x7a3   : > { %v2308_v8 = vadd.f32 %v2302_v30, %v2290_v63  ;;  %v1943_v37 = vmul.f32 %v4180_v27, %v5081_v2  ;;  %v4182_v45 = vpop.eup %4181 }
 0x7a4   : > { %v1944_v39 = vmul.f32 %v4182_v45, %v5087_v36  ;;  %v4184_v40 = vpop.eup %4183 }
 0x7a5   : > { %4189 = vrcp.f32 %v2308_v8  ;;  %1953 = vrot.lane.b32.xlu1 %v1943_v37, %s4452_s18  ;;  %v2573_v59 = vmul.f32 %v4184_v40, %v5229_v28 }
 0x7a9   : > { %1955 = vrot.lane.b32.xlu1 %v1944_v39, %s4452_s18 }
 0x7aa   : > { %v4186_v60 = vpop.eup %4185 }
 0x7ab   : > { %v2572_v43 = vmul.f32 %v4186_v60, %v5219_v15  ;;  %v4109_v60 = vld [vmem:[%s416_s21 + $0x8] sm:$0xff]  }
 0x7ac   : > { %v4188_v22 = vpop.eup %4187  ;;  %3985 = vmatprep.subr.bf16.mxu1 %v4109_v60 }
 0x7ad   : > { %2582 = vrot.lane.b32.xlu1 %v2573_v59, %s4453_s16  ;;  %2580 = vrot.lane.b32.xlu0 %v2572_v43, %s4453_s16  ;;  %v2575_v2 = vmul.f32 %v4188_v22, %v5223_v51  ;;  %v4110_v59 = vld [vmem:[%s416_s21] sm:$0xff]  }
 0x7ae   : > { %3986 = vmatpush3.bf16.msra.mxu1 %v4109_v60 }
 0x7af   : > { %3987 = vmatprep.subr.bf16.mxu1 %v4110_v59 }
 0x7b1   : > { %2586 = vrot.lane.b32.xlu1 %v2575_v2, %s4453_s16 }
 0x7b2   : > { %v4190_v6 = vpop.eup %4189  ;;  %3988 = vmatpush3.bf16.msra.mxu1 %v4110_v59 }
 0x7b3   : > { %v2574_v5 = vmul.f32 %v4190_v6, %v5217_v9 }
 0x7b5   : > { %2584 = vrot.lane.b32.xlu0 %v2574_v5, %s4453_s16 }
 0x7e0   : > { %v2915_v36 = vpop.xlane.xlu0 %2914 }
 0x7e4   : > { %v2927_v58 = vpop.xlane.xlu0 %2926 }
 0x7e5   : > { %v2937_v25 = vadd.f32 %v2927_v58, %v2915_v36 }
 0x7e6   : > { %v2918_v10 = vpop.xlane.xlu1 %2917 }
 0x7e8   : > { %v2921_v42 = vpop.xlane.xlu0 %2920 }
 0x7ea   : > { %v2930_v4 = vpop.xlane.xlu1 %2929 }
 0x7eb   : > { %v2938_v44 = vadd.f32 %v2930_v4, %v2918_v10 }
 0x7ec   : > { %v2933_v29 = vpop.xlane.xlu0 %2932 }
 0x7ed   : > { %v2939_v53 = vadd.f32 %v2933_v29, %v2921_v42 }
 0x7ee   : > { %v2924_v28 = vpop.xlane.xlu1 %2923 }
 0x7f0   : > { %v1031_v34 = vpop.xlane.xlu0 %1030 }
 0x7f2   : > { %v2936_v15 = vpop.xlane.xlu1 %2935 }
 0x7f3   : > { %v2940_v50 = vadd.f32 %v2936_v15, %v2924_v28 }
 0x7f4   : > { %v1043_v18 = vpop.xlane.xlu0 %1042 }
 0x7f5   : > { %v1053_v62 = vadd.f32 %v1043_v18, %v1031_v34 }
 0x7f6   : > { %v1034_v48 = vpop.xlane.xlu1 %1033 }
 0x7f7   : > { %4191 = vrcp.f32 %v1053_v62 }
 0x7f8   : > { %v1037_v31 = vpop.xlane.xlu0 %1036 }
 0x7fa   : > { %v1046_v51 = vpop.xlane.xlu1 %1045 }
 0x7fb   : > { %v1054_v3 = vadd.f32 %v1046_v51, %v1034_v48 }
 0x7fc   : > { %v1049_v20 = vpop.xlane.xlu0 %1048 }
 0x7fd   : > { %4193 = vrcp.f32 %v1054_v3  ;;  %v1055_v9 = vadd.f32 %v1049_v20, %v1037_v31 }
 0x7fe   : > { %v1040_v17 = vpop.xlane.xlu1 %1039 }
 0x7ff   : > { %4195 = vrcp.f32 %v1055_v9 }
 0x802   : > { %v1052_v55 = vpop.xlane.xlu1 %1051 }
 0x803   : > { %v1056_v0 = vadd.f32 %v1052_v55, %v1040_v17 }
 0x804   : > { %v4192_v23 = vpop.eup %4191 }
 0x805   : > { %4197 = vrcp.f32 %v1056_v0  ;;  %v1311_v56 = vmul.f32 %v4192_v23, %v4939_v14 }
 0x806   : > { %4199 = vrcp.f32 %v2937_v25 }
 0x807   : > { %1315 = vst.msk [vmem:[#allocation3] sm:$0xff] %vm703_vm2, %v1311_v56  ;;  %4201 = vrcp.f32 %v2938_v44  ;;  %v4207_v56 = vld [vmem:[#allocation2 + $0x10] sm:$0xff] }
 0x808   : > { %4203 = vrcp.f32 %v2939_v53 }
 0x809   : > { %4205 = vrcp.f32 %v2940_v50 }
 0x80a   : > { %v4194_v24 = vpop.eup %4193 }
 0x80b   : > { %v1950_v35 = vpop.permute.xlu0 %1949  ;;  %v1312_v32 = vmul.f32 %v4194_v24, %v4943_v26 }
 0x80c   : > { %v4196_v41 = vpop.eup %4195  ;;  %1962 = vst.msk [vmem:[#allocation3] sm:$0xff] %vm1961_vm7, %v1950_v35 }
 0x80d   : > { %1316 = vst.msk [vmem:[#allocation3 + $0x8] sm:$0xff] %vm703_vm2, %v1312_v32  ;;  %v1313_v46 = vmul.f32 %v4196_v41, %v4937_v11  ;;  %v4208_v32 = vld [vmem:[#allocation2] sm:$0xff] }
 0x80f   : > { %v1952_v12 = vpop.permute.xlu1 %1951  ;;  %1317 = vst.msk [vmem:[#allocation3 + $0x10] sm:$0xff] %vm703_vm2, %v1313_v46 }
 0x810   : > { %1963 = vst.msk [vmem:[#allocation3 + $0x8] sm:$0xff] %vm1961_vm7, %v1952_v12  ;;  %v4209_v12 = vld [vmem:[#allocation2 + $0x18] sm:$0xff] }
 0x812   : > { %v4198_v14 = vpop.eup %4197 }
 0x813   : > { %v1314_v1 = vmul.f32 %v4198_v14, %v4941_v21  ;;  %v4200_v22 = vpop.eup %4199 }
 0x814   : > { %v4202_v10 = vpop.eup %4201 }
 0x815   : > { %1318 = vst.msk [vmem:[#allocation3 + $0x18] sm:$0xff] %vm703_vm2, %v1314_v1  ;;  %v4204_v4 = vpop.eup %4203 }
 0x816   : > { %v4206_v15 = vpop.eup %4205 }
 0x817   : > { %v1954_v61 = vpop.permute.xlu1 %1953 }
 0x818   : > { %1964 = vst.msk [vmem:[#allocation3 + $0x10] sm:$0xff] %vm1961_vm7, %v1954_v61  ;;  %v4210_v61 = vld [vmem:[#allocation2 + $0x8] sm:$0xff] }
 0x819   : > { %v2993_v26 = vpop.f32.mrf.mxu0 }
 0x81b   : > { %v3959_v47 = vpop.f32.mrf.mxu0  ;;  %v1956_v54 = vpop.permute.xlu1 %1955 }
 0x81c   : > { %1965 = vst.msk [vmem:[#allocation3 + $0x18] sm:$0xff] %vm1961_vm7, %v1956_v54 }
 0x81d   : > { %v2996_v11 = vpop.f32.mrf.mxu0 }
 0x81f   : > { %v3960_v52 = vpop.f32.mrf.mxu0  ;;  %v3041_v49 = vpop.f32.mrf.mxu1 }
 0x820   : > { %v2583_v16 = vpop.permute.xlu1 %2582  ;;  %v2581_v21 = vpop.permute.xlu0 %2580 }
 0x821   : > { %2594 = vst.msk [vmem:[#allocation3 + $0x8] sm:$0xff] %vm2592_vm8, %v2583_v16  ;;  %2593 = vst.msk [vmem:[#allocation3] sm:$0xff] %vm2592_vm8, %v2581_v21  ;;  %v3965_v19 = vpop.f32.mrf.mxu1  ;;  %v3089_v33 = vpop.f32.mrf.mxu0 }
 0x823   : > { %v3044_v13 = vpop.f32.mrf.mxu1  ;;  %v3971_v57 = vpop.f32.mrf.mxu0 }
 0x824   : > { %v2587_v7 = vpop.permute.xlu1 %2586 }
 0x825   : > { %2596 = vst.msk [vmem:[#allocation3 + $0x18] sm:$0xff] %vm2592_vm8, %v2587_v7  ;;  %v3966_v38 = vpop.f32.mrf.mxu1  ;;  %v3092_v63 = vpop.f32.mrf.mxu0 }
 0x827   : > { %v3972_v27 = vpop.f32.mrf.mxu0  ;;  %v3137_v30 = vpop.f32.mrf.mxu1 }
 0x828   : > { %v2585_v8 = vpop.permute.xlu0 %2584 }
 0x829   : > { %2595 = vst.msk [vmem:[#allocation3 + $0x10] sm:$0xff] %vm2592_vm8, %v2585_v8  ;;  %v3977_v37 = vpop.f32.mrf.mxu1  ;;  %v3983_v45 = vpop.f32.mrf.mxu0 }
 0x82a   : > { %v3197_v5 = vadd.f32 %v3983_v45, %v3089_v33 }
 0x82b   : > { %v3140_v39 = vpop.f32.mrf.mxu1  ;;  %v3188_v40 = vpop.f32.mrf.mxu0 }
 0x82c   : > { %v3189_v43 = vadd.f32 %v3188_v40, %v2993_v26  ;;  %v3205_v29 = vmul.f32 %v4204_v4, %v3197_v5 }
 0x82d   : > { %v3978_v2 = vpop.f32.mrf.mxu1  ;;  %v3984_v6 = vpop.f32.mrf.mxu0 }
 0x82e   : > { %v3203_v36 = vmul.f32 %v4200_v22, %v3189_v43  ;;  %v3200_v28 = vadd.f32 %v3984_v6, %v3137_v30 }
 0x82f   : > { %v3191_v58 = vpop.f32.mrf.mxu0 }
 0x830   : > { %v3192_v42 = vadd.f32 %v3191_v58, %v3041_v49  ;;  %3211 = vrot.lane.b32.xlu0 %v3203_v36, %s4454_s12  ;;  %v3206_v18 = vmul.f32 %v4206_v15, %v3200_v28 }
 0x832   : > { %v3204_v34 = vmul.f32 %v4202_v10, %v3192_v42 }
 0x834   : > { %3215 = vrot.lane.b32.xlu0 %v3205_v29, %s4454_s12  ;;  %3213 = vrot.lane.b32.xlu1 %v3204_v34, %s4454_s12 }
 0x838   : > { %3217 = vrot.lane.b32.xlu1 %v3206_v18, %s4454_s12 }
 0x8a2   : > { %v3212_v62 = vpop.permute.xlu0 %3211 }
 0x8a3   : > { %3224 = vst.msk [vmem:[#allocation3] sm:$0xff] %vm3223_vm9, %v3212_v62 }
 0x8a6   : > { %v3216_v48 = vpop.permute.xlu0 %3215  ;;  %v3214_v31 = vpop.permute.xlu1 %3213 }
 0x8a7   : > { %3226 = vst.msk [vmem:[#allocation3 + $0x10] sm:$0xff] %vm3223_vm9, %v3216_v48  ;;  %3225 = vst.msk [vmem:[#allocation3 + $0x8] sm:$0xff] %vm3223_vm9, %v3214_v31 }
 0x8aa   : > { %v3218_v51 = vpop.permute.xlu1 %3217  ;;  %v3228_v3 = vld [vmem:[#allocation3] sm:$0xff] }
 0x8ab   : > { %3227 = vst.msk [vmem:[#allocation3 + $0x18] sm:$0xff] %vm3223_vm9, %v3218_v51 }
 0x8ae   : > { %v3229_v20 = vld [vmem:[#allocation3 + $0x8] sm:$0xff]  ;;  %v3230_v17 = vld [vmem:[#allocation3 + $0x10] sm:$0xff] }
 0x8af   : > { %v3232_v9 = vpack.c.bf16 %v3229_v20, %v3228_v3 }
 0x8b1   : > { %3989 = vmatprep.mubr.msk.bf16.mxu1 %vm509_vm1, %v3232_v9 }
 0x8b2   : > { %v3231_v55 = vld [vmem:[#allocation3 + $0x18] sm:$0xff] }
 0x8b3   : > { %v3233_v0 = vpack.c.bf16 %v3231_v55, %v3230_v17 }
 0x8b5   : > { %3990 = vmatmul.mubr.msk.bf16.vlgmr.msra.gmra.mxu1 %vm509_vm1, %v3233_v0 }
 0x975   : > { %v3991_v23 = vpop.f32.mrf.mxu1 }
 0x976   : > { %v3307_v24 = vadd.f32 %v4207_v56, %v3991_v23 }
 0x977   : > { %v3290_v35 = vpop.f32.mrf.mxu1 }
 0x978   : > { %3311 = vst.msk [vmem:[#allocation2 + $0x10] sm:$0xff] %vm509_vm1, %v3307_v24  ;;  %v3305_v41 = vadd.f32 %v4208_v32, %v3290_v35 }
 0x979   : > { %v3992_v46 = vpop.f32.mrf.mxu1 }
 0x97a   : > { %3309 = vst.msk [vmem:[#allocation2] sm:$0xff] %vm509_vm1, %v3305_v41  ;;  %v3308_v14 = vadd.f32 %v4209_v12, %v3992_v46  ;;  %3316 = sbr.rel (%p3596_p11) target bundleno = 2433 (0x981), region = 76 }
 0x97b   : > { %v3293_v1 = vpop.f32.mrf.mxu1 }
 0x97c   : > { %3312 = vst.msk [vmem:[#allocation2 + $0x18] sm:$0xff] %vm509_vm1, %v3308_v14  ;;  %v3306_v26 = vadd.f32 %v4210_v61, %v3293_v1 }
 0x97e   : > { %3310 = vst.msk [vmem:[#allocation2 + $0x8] sm:$0xff] %vm509_vm1, %v3306_v26 }
 0x97f   : > { %3317 = vst.msk [vmem:[#allocation13] sm:$0xff] %vm509_vm1, %v3305_v41  ;;  %3318 = vst.msk [vmem:[#allocation13 + $0x8] sm:$0xff] %vm509_vm1, %v3306_v26 }
 0x980   : > { %3319 = vst.msk [vmem:[#allocation13 + $0x10] sm:$0xff] %vm509_vm1, %v3307_v24  ;;  %3320 = vst.msk [vmem:[#allocation13 + $0x18] sm:$0xff] %vm509_vm1, %v3308_v14 }
 0x981 PF: > { %p4037_p0 = scmp.eq.s32.totalorder %s4590_s30, 1  ;;  %s4455_s20 = smov [#allocation13]  }
 0x982   : > { %s3330_s9 = sshll.u32 %s4455_s20, 4  ;;  %s3331_s9 = int_to_ptr.vmem [resolvable:$true] %s3330_s9 }
 0x983   : > { %s4349_s28 = scalar_lea.vmem %s3331_s9, 512  ;;  %p4356_p3 = scmp.lt.s32.totalorder %s3331_s9, %s3331_s9 }
 0x984   : > { %p4350_p1 = scmp.ne.s32.totalorder %s3331_s9, %s4349_s28  ;;  %p4357_p2 = scmp.lt.s32.totalorder %s4349_s28, %s4349_s28 }
 0x986   : > { %p4351_p12 = pnand %p4350_p1, %p4037_p0  ;;  %p4358_p4 = por %p4357_p2, %p4356_p3 }
 0x988   : > { %p4352_p13 = pneg %p4351_p12 }
 0x98a   : > { %p4359_p5 = pnand %p4358_p4, %p4352_p13 }
 0x98c   : > { %4362 = shalt.err (!%p4359_p5)
}
 0x98d   : > { %s4456_s27 = smov 128  }
 0x98e   : > { %4014 = dma.vmem_to_hbm [thread:$0]  (%p4037_p0), %s3331_s9, 512, %s5426_s7, [#allocation6], %s4456_s27, %s4456_s27, %s4452_s18  }
 0x98f   : > { %4410 = dma.done.wait (%p4037_p0), [#allocation6], 512  }
 0x990   : > { %4412 = vsyncadd (%p4037_p0), [#allocation6], 4294966784 }
 0x991 PF: > { %s25_s29 = sadd.s32 1, %s4435_s29   ;;  %s5447_s27 = sld [smem:[#allocation18_spill]] }
 0x992   : > { %p22_p8 = scmp.ge.s32.totalorder %s25_s29, 4   ;;  %s5448_s28 = sld [smem:[#allocation19_spill]] }
 0x993   : > { %s5449_s24 = smov %s4419_s25  ;;  %s5450_s25 = smov %s4423_s26 }
 0x994   : > { %s5451_s26 = smov %s4543_s13  ;;  %24 = sbr.rel (!%p22_p8) target bundleno = 11 (0xb), region = 141 }
 0x999   :  { %3346 = vsyncpa [#allocation5], 1 }
 0x99a   :  { %3348 = vsyncpa [#allocation5 + $0x1], 1 }
 0x99b   :  { %3349 = vsyncpa [#allocation8], 1 }
 0x99c   :  { %3351 = vsyncpa [#allocation8 + $0x1], 1 }
 0x99d   :  { %3352 = vsyncpa [#allocation11], 1 }
 0x99e   :  { %3354 = vsyncpa [#allocation11 + $0x1], 1 }
 0x99f   :  { %3355 = vsyncpa [#allocation6], 1 }
 0x9a0   :  { %3357 = vsyncpa [#allocation6 + $0x1], 1 }

</bundles_post_ra>
